<compile_context>
chip_gen: v6e
topology: v6e:2x2x1
jax: 0.10.0
libtpu: 0.0.40
codegen_flags: <defaults>
</compile_context>

<pallas_src>
import functools

import jax
import jax.numpy as jnp
from jax import lax
from jax.experimental import pallas as pl
from jax.experimental.pallas import tpu as pltpu


def _default_vmem_limit():
    try:
        cap = pltpu.get_tpu_info().vmem_capacity_bytes
    except Exception:
        cap = 64 * 1024 * 1024          # conservative v7x-sized fallback
    return int(min(cap * 3 // 4, 96 * 1024 * 1024))


_VMEM_LIMIT = _default_vmem_limit()


def _pick_block_b(b, n, m, d, vmem_limit):
    """Batch-block size: as large as the VMEM budget allows, but keep >=2 grid
    steps when B >= 2 so v7x's two TensorCores both get work."""
    per_elem = 2 * 2 * (n + m) * d * 4          # double-buffered x+f blocks, f32
    tb = max(1, min(32, (vmem_limit // 4) // max(per_elem, 1)))
    tb = min(tb, b)
    if b >= 2:
        tb = min(tb, max(1, b // 2))
    return tb


def _f_to_f_kernel(
    x_ref,        # (TB, n, D)  f32   x block for this grid step
    f_ref,        # (TB, m, D)  f32   f block
    cls_ref,      # (1, D)      f32   ViT cls token
    ln_w_ref,     # (1, D)      f32   last transformer layer PreNorm weight
    ln_b_ref,     # (1, D)      f32   last transformer layer PreNorm bias
    wqkv_ref,     # (D, 3D)     bf16  to_qkv weight (no bias)
    wout_ref,     # (D, D)      bf16  to_out weight
    bout_ref,     # (1, D)      f32   to_out bias
    wv_ref,       # (D, D)      bf16  Cross_Attention V weight slice
    bv_ref,       # (1, D)      f32   Cross_Attention V bias slice
    hln_w_ref,    # (1, D)      f32   mlp_head LayerNorm weight
    hln_b_ref,    # (1, D)      f32   mlp_head LayerNorm bias
    wh_ref,       # (D, 128)    f32   mlp_head Linear weight, lane-padded
    bh_ref,       # (1, 128)    f32   mlp_head Linear bias, lane-padded
    out_ref,      # (1, TB, 128) f32
):
    tb, n, d = x_ref.shape
    m = f_ref.shape[1]
    s1 = n + 1
    scale = 1.0 / (d ** 0.5)            # Attention: dim_head ** -0.5 (dim_head == dim here)
    bf16 = jnp.bfloat16

    def layer_norm(y, w, b):
        mu = jnp.mean(y, axis=-1, keepdims=True)
        yc = y - mu
        var = jnp.mean(yc * yc, axis=-1, keepdims=True)   # centered (two-pass) variance
        return yc * lax.rsqrt(var + 1e-5) * w + b

    x3 = x_ref[...]                                        # (TB, n, D), stays in vregs
    cls = cls_ref[...]                                     # (1, D)
    ln_w = ln_w_ref[...]
    ln_b = ln_b_ref[...]

    # ---- PreNorm LayerNorm ----------------------------------------------------
    ln_x = layer_norm(x3, ln_w.reshape(1, 1, d), ln_b.reshape(1, 1, d))   # (TB, n, D)
    ln_c = layer_norm(cls, ln_w, ln_b)                                    # (1, D), batch-shared

    # ---- qkv projection: one tall bf16 MXU matmul over all TB*n x-rows, plus a
    #      single batch-independent 1-row matmul for the cls token ---------------
    qkv_x = jnp.dot(ln_x.reshape(tb * n, d).astype(bf16), wqkv_ref[...],
                    preferred_element_type=jnp.float32)                   # (TB*n, 3D)
    qkv_x = qkv_x.reshape(tb, n, 3 * d)
    qkv_c = jnp.dot(ln_c.astype(bf16), wqkv_ref[...],
                    preferred_element_type=jnp.float32)                   # (1, 3D)

    q_xf = qkv_x[..., :d]
    k_xf = qkv_x[..., d:2 * d]
    v_x = qkv_x[..., 2 * d:]
    q_x = q_xf.astype(bf16)
    k_x = k_xf.astype(bf16)
    q_c = qkv_c[:, :d]
    k_c = qkv_c[:, d:2 * d]
    v_c = qkv_c[:, 2 * d:]

    # ---- single-head self-attention over the (x rows + cls) sequence.
    #      The batch-shared cls row is handled as explicit border blocks, so no
    #      concat / scratch round trip and every array stays tile-aligned. --------
    dots_xx = jnp.einsum('bid,bjd->bij', q_x, k_x,
                         preferred_element_type=jnp.float32) * scale      # (TB, n, n)
    dots_xc = jnp.sum(q_xf * k_c.reshape(1, 1, d),
                      axis=-1, keepdims=True) * scale                     # (TB, n, 1)  q_i . k_cls
    dots_cx = jnp.sum(k_xf * q_c.reshape(1, 1, d),
                      axis=-1, keepdims=True) * scale                     # (TB, n, 1)  q_cls . k_j
    dots_cc = jnp.sum(q_c * k_c, axis=-1, keepdims=True) * scale          # (1, 1)

    # softmax (over all s1 keys) for the x-query rows
    m_x = jnp.maximum(jnp.max(dots_xx, axis=-1, keepdims=True), dots_xc)  # (TB, n, 1)
    p_xx = jnp.exp(dots_xx - m_x)
    p_xc = jnp.exp(dots_xc - m_x)
    inv_x = pl.reciprocal(jnp.sum(p_xx, axis=-1, keepdims=True) + p_xc, approx=True)
    o_x = (jnp.einsum('bij,bjd->bid', p_xx.astype(bf16), v_x.astype(bf16),
                      preferred_element_type=jnp.float32)
           + p_xc * v_c.reshape(1, 1, d)) * inv_x                         # (TB, n, D)
    o_x = o_x + ln_x                                                      # Attention: out = out + x

    # softmax for the cls-query row
    m_c = jnp.maximum(jnp.max(dots_cx, axis=1, keepdims=True),
                      dots_cc.reshape(1, 1, 1))                           # (TB, 1, 1)
    p_cx = jnp.exp(dots_cx - m_c)                                         # (TB, n, 1)
    p_cc = jnp.exp(dots_cc.reshape(1, 1, 1) - m_c)                        # (TB, 1, 1)
    inv_c = pl.reciprocal(jnp.sum(p_cx, axis=1, keepdims=True) + p_cc, approx=True)
    o_c = (jnp.sum(p_cx * v_x, axis=1, keepdims=True)
           + p_cc * v_c.reshape(1, 1, d)) * inv_c                         # (TB, 1, D)
    o_c = o_c + ln_c.reshape(1, 1, d)

    # ---- to_out + outer residual. Only the per-batch row sum of x_out is consumed
    #      (mean over the concatenated sequence), so project the row sum once:
    #      sum_i(o_i @ W + b) + sum_i(x1_i) == (sum_i o_i) @ W + s1*b + sum_i x1_i.
    o_sum = jnp.sum(o_x, axis=1) + jnp.sum(o_c, axis=1)                   # (TB, D)
    xsum = jnp.sum(x3, axis=1)                                            # (TB, D)
    sum_x1 = xsum + cls                                                   # (TB, D)
    sum_xout = (jnp.dot(o_sum.astype(bf16), wout_ref[...],
                        preferred_element_type=jnp.float32)
                + s1 * bout_ref[...] + sum_x1)                            # (TB, D)

    # ---- Cross_Attention(f, x): softmax over a singleton head dim -> weights == 1,
    #      every f_out row equals sum_j V(x)_j; only row sums are consumed. --------
    vsum = (jnp.dot(xsum.astype(bf16), wv_ref[...],
                    preferred_element_type=jnp.float32) + n * bv_ref[...])  # (TB, D)
    sum_f = jnp.sum(f_ref[...], axis=1)                                   # (TB, D)

    # ---- torch.mean over concat([x_out, f_out, f], dim=1) ------------------------
    pooled = (sum_xout + m * vsum + sum_f) * (1.0 / (s1 + 2 * m))         # (TB, D)

    # ---- mlp_head: LayerNorm + Linear(D, num_classes) (dropout = identity) -------
    h = layer_norm(pooled, hln_w_ref[...], hln_b_ref[...])
    out = jnp.dot(h, wh_ref[...], preferred_element_type=jnp.float32) + bh_ref[...]
    out_ref[0] = out.astype(out_ref.dtype)                                # lane-dense (TB, 128) store


def prepare_params(params):
    """One-time weight preparation (hoisted out of the per-call path): bf16 casts of
    the MXU operands, lane-padding of the tiny class head, bias reshapes."""
    d = params["cls"].shape[-1]
    nc = params["bh"].shape[0]
    ncp = 128
    last = params["layers"][-1]      # Transformer bug: only the last layer matters
    return dict(
        cls=params["cls"].reshape(1, d).astype(jnp.float32),
        ln_w=last["ln_w"].reshape(1, d).astype(jnp.float32),
        ln_b=last["ln_b"].reshape(1, d).astype(jnp.float32),
        wqkv=last["wqkv"].astype(jnp.bfloat16),
        wout=last["wout"].astype(jnp.bfloat16),
        bout=last["bout"].reshape(1, d).astype(jnp.float32),
        wv=params["wqkv_c"][:, 2 * d:].astype(jnp.bfloat16),
        bv=params["bqkv_c"][2 * d:].reshape(1, d).astype(jnp.float32),
        hln_w=params["hln_w"].reshape(1, d).astype(jnp.float32),
        hln_b=params["hln_b"].reshape(1, d).astype(jnp.float32),
        wh=jnp.pad(params["wh"], ((0, 0), (0, ncp - nc))).astype(jnp.float32),
        bh=jnp.pad(params["bh"], (0, ncp - nc)).reshape(1, ncp).astype(jnp.float32),
    )


@functools.partial(jax.jit, static_argnames=("block_b",))
def _f_to_f_padded(x, f, prep, *, block_b):
    b, n, d = x.shape
    m = f.shape[1]
    tb = block_b
    nb = (b + tb - 1) // tb
    b_pad = nb * tb
    if b_pad != b:
        x = jnp.pad(x, ((0, b_pad - b), (0, 0), (0, 0)))
        f = jnp.pad(f, ((0, b_pad - b), (0, 0), (0, 0)))
    ncp = prep["wh"].shape[1]

    out = pl.pallas_call(
        _f_to_f_kernel,
        out_shape=jax.ShapeDtypeStruct((nb, tb, ncp), jnp.float32),
        grid=(nb,),
        in_specs=[
            pl.BlockSpec((tb, n, d), lambda i: (i, 0, 0)),     # x block
            pl.BlockSpec((tb, m, d), lambda i: (i, 0, 0)),     # f block
            pl.BlockSpec((1, d), lambda i: (0, 0)),            # cls token
            pl.BlockSpec((1, d), lambda i: (0, 0)),            # ln_w
            pl.BlockSpec((1, d), lambda i: (0, 0)),            # ln_b
            pl.BlockSpec((d, 3 * d), lambda i: (0, 0)),        # wqkv (bf16)
            pl.BlockSpec((d, d), lambda i: (0, 0)),            # wout (bf16)
            pl.BlockSpec((1, d), lambda i: (0, 0)),            # bout
            pl.BlockSpec((d, d), lambda i: (0, 0)),            # cross V weight (bf16)
            pl.BlockSpec((1, d), lambda i: (0, 0)),            # cross V bias
            pl.BlockSpec((1, d), lambda i: (0, 0)),            # head ln weight
            pl.BlockSpec((1, d), lambda i: (0, 0)),            # head ln bias
            pl.BlockSpec((d, ncp), lambda i: (0, 0)),          # head weight (lane-padded)
            pl.BlockSpec((1, ncp), lambda i: (0, 0)),          # head bias (lane-padded)
        ],
        out_specs=pl.BlockSpec((1, tb, ncp), lambda i: (i, 0, 0)),
        compiler_params=pltpu.CompilerParams(
            dimension_semantics=("parallel",),
            vmem_limit_bytes=_VMEM_LIMIT,
        ),
    )(x, f, prep["cls"], prep["ln_w"], prep["ln_b"], prep["wqkv"], prep["wout"],
      prep["bout"], prep["wv"], prep["bv"], prep["hln_w"], prep["hln_b"],
      prep["wh"], prep["bh"])
    return out.reshape(b_pad, ncp)[:b]


def f_to_f_forward(x, f, prep, num_classes, block_b=None):
    """x: (B, N, D), f: (B, M, D) -> (B, num_classes). Matches F_to_F.forward."""
    b, n, _ = x.shape
    m = f.shape[1]
    d = x.shape[2]
    if block_b is None:
        block_b = _pick_block_b(b, n, m, d, _VMEM_LIMIT)
    out = _f_to_f_padded(x, f, prep, block_b=block_b)
    return out[:, :num_classes]


# ------------------------- pure-JAX literal reference ------------------------------
def _layernorm(y, w, b, eps=1e-5):
    mu = jnp.mean(y, axis=-1, keepdims=True)
    var = jnp.var(y, axis=-1, keepdims=True)
    return (y - mu) * lax.rsqrt(var + eps) * w + b


def _reference_forward(x, f, params):
    b, n, d = x.shape
    m = f.shape[1]
    cls = jnp.broadcast_to(params["cls"].reshape(1, 1, d), (b, 1, d))
    x1 = jnp.concatenate([cls, x], axis=1)                       # (b, n+1, d)
    x_out = x1
    for lp in params["layers"]:                                  # x never updated, ff never applied
        ln = _layernorm(x1, lp["ln_w"], lp["ln_b"])
        qkv = ln @ lp["wqkv"]
        q, k, v = jnp.split(qkv, 3, axis=-1)
        dots = jnp.einsum("bid,bjd->bij", q, k) * (d ** -0.5)
        attn = jax.nn.softmax(dots, axis=-1)
        o = jnp.einsum("bij,bjd->bid", attn, v) + ln
        o = o @ lp["wout"] + lp["bout"]
        x_out = o + x1
    # Cross_Attention(f, x): literal, including the softmax over the head dim.
    qkv_x = x @ params["wqkv_c"] + params["bqkv_c"]
    qkv_f = f @ params["wqkv_c"] + params["bqkv_c"]
    q_c = qkv_f[..., :d][:, None]
    k_c = qkv_x[..., d:2 * d][:, None]
    v_c = qkv_x[..., 2 * d:][:, None]
    att = jnp.einsum("bhid,bhjd->bhij", q_c, k_c) / (d ** 0.5)
    att = jax.nn.softmax(att, axis=1)                            # singleton head dim -> ones
    f_out = jnp.einsum("bhij,bhjd->bhid", att, v_c)
    f_out = jnp.swapaxes(f_out, 1, 2).reshape(b, m, d)
    cat = jnp.concatenate([x_out, f_out, f], axis=1)
    pooled = jnp.mean(cat, axis=1)
    h = _layernorm(pooled, params["hln_w"], params["hln_b"])
    return h @ params["wh"] + params["bh"]


if __name__ == "__main__":
    # Scaled-down shapes consistent with the module (dim 6272 -> 256, 7 classes).
    B, N_X, N_F, DIM, NC = 4, 8, 8, 256, 7

    keys = iter(jax.random.split(jax.random.PRNGKey(0), 32))

    def nxt():
        return next(keys)

    def unif(k, fan_in, shape):
        bound = 1.0 / (fan_in ** 0.5)
        return jax.random.uniform(k, shape, jnp.float32, -bound, bound)

    x = jax.random.normal(nxt(), (B, N_X, DIM), dtype=jnp.float32)
    f = jax.random.normal(nxt(), (B, N_F, DIM), dtype=jnp.float32)

    layers = []
    for _ in range(2):                         # ViT depth = 2 (only the last layer matters)
        layers.append(dict(
            ln_w=1.0 + 0.05 * jax.random.normal(nxt(), (DIM,), dtype=jnp.float32),
            ln_b=0.05 * jax.random.normal(nxt(), (DIM,), dtype=jnp.float32),
            wqkv=unif(nxt(), DIM, (DIM, 3 * DIM)),      # to_qkv (bias=False)
            wout=unif(nxt(), DIM, (DIM, DIM)),          # to_out Linear
            bout=unif(nxt(), DIM, (DIM,)),
        ))

    params = dict(
        cls=jax.random.normal(nxt(), (DIM,), dtype=jnp.float32),
        layers=layers,
        wqkv_c=unif(nxt(), DIM, (DIM, 3 * DIM)),        # Cross_Attention qkv (bias=True)
        bqkv_c=unif(nxt(), DIM, (3 * DIM,)),
        hln_w=1.0 + 0.05 * jax.random.normal(nxt(), (DIM,), dtype=jnp.float32),
        hln_b=0.05 * jax.random.normal(nxt(), (DIM,), dtype=jnp.float32),
        wh=unif(nxt(), DIM, (DIM, NC)),
        bh=unif(nxt(), DIM, (NC,)),
    )

    prep = prepare_params(params)              # one-time weight prep, outside the call path
    out = f_to_f_forward(x, f, prep, num_classes=NC)
    out = jax.block_until_ready(out)

    ref = _reference_forward(x, f, params)
    assert out.shape == (B, NC)
    # bf16 MXU operands (qkv / attention / projections) with f32 accumulation and an
    # approx softmax reciprocal -> compare to the f32 reference with a loose tolerance.
    assert jnp.allclose(out, ref, atol=3e-2, rtol=3e-2), "mismatch vs JAX reference"

    print("KERNEL_OK")
</pallas_src>

<mosaic_0001>
module attributes {stable_mosaic.version = 11 : i64} {
  func.func @_f_to_f_kernel(%arg0: i32, %arg1: memref<2x8x256xf32, #tpu.memory_space<vmem>>, %arg2: memref<2x8x256xf32, #tpu.memory_space<vmem>>, %arg3: memref<1x256xf32, #tpu.memory_space<vmem>>, %arg4: memref<1x256xf32, #tpu.memory_space<vmem>>, %arg5: memref<1x256xf32, #tpu.memory_space<vmem>>, %arg6: memref<256x768xbf16, #tpu.memory_space<vmem>>, %arg7: memref<256x256xbf16, #tpu.memory_space<vmem>>, %arg8: memref<1x256xf32, #tpu.memory_space<vmem>>, %arg9: memref<256x256xbf16, #tpu.memory_space<vmem>>, %arg10: memref<1x256xf32, #tpu.memory_space<vmem>>, %arg11: memref<1x256xf32, #tpu.memory_space<vmem>>, %arg12: memref<1x256xf32, #tpu.memory_space<vmem>>, %arg13: memref<256x128xf32, #tpu.memory_space<vmem>>, %arg14: memref<1x128xf32, #tpu.memory_space<vmem>>, %arg15: memref<1x2x128xf32, #tpu.memory_space<vmem>>) attributes {dimension_semantics = [#tpu.dimension_semantics<parallel>], iteration_bounds = array<i64: 2>, scalar_prefetch = 0 : i64, scratch_operands = 0 : i64, tpu.core_type = #tpu.core_type<tc>, window_params = [{transform_indices = @transform_0, window_bounds = array<i64: 2, 8, 256>}, {transform_indices = @transform_1, window_bounds = array<i64: 2, 8, 256>}, {pipeline_mode = #tpu.pipeline_mode<synchronous>, transform_indices = @transform_2, window_bounds = array<i64: 1, 256>}, {pipeline_mode = #tpu.pipeline_mode<synchronous>, transform_indices = @transform_3, window_bounds = array<i64: 1, 256>}, {pipeline_mode = #tpu.pipeline_mode<synchronous>, transform_indices = @transform_4, window_bounds = array<i64: 1, 256>}, {pipeline_mode = #tpu.pipeline_mode<synchronous>, transform_indices = @transform_5, window_bounds = array<i64: 256, 768>}, {pipeline_mode = #tpu.pipeline_mode<synchronous>, transform_indices = @transform_6, window_bounds = array<i64: 256, 256>}, {pipeline_mode = #tpu.pipeline_mode<synchronous>, transform_indices = @transform_7, window_bounds = array<i64: 1, 256>}, {pipeline_mode = #tpu.pipeline_mode<synchronous>, transform_indices = @transform_8, window_bounds = array<i64: 256, 256>}, {pipeline_mode = #tpu.pipeline_mode<synchronous>, transform_indices = @transform_9, window_bounds = array<i64: 1, 256>}, {pipeline_mode = #tpu.pipeline_mode<synchronous>, transform_indices = @transform_10, window_bounds = array<i64: 1, 256>}, {pipeline_mode = #tpu.pipeline_mode<synchronous>, transform_indices = @transform_11, window_bounds = array<i64: 1, 256>}, {pipeline_mode = #tpu.pipeline_mode<synchronous>, transform_indices = @transform_12, window_bounds = array<i64: 256, 128>}, {pipeline_mode = #tpu.pipeline_mode<synchronous>, transform_indices = @transform_13, window_bounds = array<i64: 1, 128>}, {transform_indices = @transform_14, window_bounds = array<i64: 1, 2, 128>}]} {
    %c0 = arith.constant 0 : index
    %c0_0 = arith.constant 0 : index
    %c0_1 = arith.constant 0 : index
    %0 = vector.load %arg1[%c0, %c0_0, %c0_1] : memref<2x8x256xf32, #tpu.memory_space<vmem>>, vector<2x8x256xf32>
    %c0_2 = arith.constant 0 : index
    %c0_3 = arith.constant 0 : index
    %1 = vector.load %arg3[%c0_2, %c0_3] : memref<1x256xf32, #tpu.memory_space<vmem>>, vector<1x256xf32>
    %c0_4 = arith.constant 0 : index
    %c0_5 = arith.constant 0 : index
    %2 = vector.load %arg4[%c0_4, %c0_5] : memref<1x256xf32, #tpu.memory_space<vmem>>, vector<1x256xf32>
    %c0_6 = arith.constant 0 : index
    %c0_7 = arith.constant 0 : index
    %3 = vector.load %arg5[%c0_6, %c0_7] : memref<1x256xf32, #tpu.memory_space<vmem>>, vector<1x256xf32>
    %4 = vector.shape_cast %2 : vector<1x256xf32> to vector<1x1x256xf32>
    %5 = vector.shape_cast %3 : vector<1x256xf32> to vector<1x1x256xf32>
    %cst = arith.constant dense<0.000000e+00> : vector<2x8xf32>
    %6 = vector.multi_reduction <add>, %0, %cst [2] : vector<2x8x256xf32> to vector<2x8xf32>
    %7 = vector.shape_cast %6 : vector<2x8xf32> to vector<2x8x1xf32>
    %cst_8 = arith.constant 2.560000e+02 : f32
    %8 = vector.broadcast %cst_8 : f32 to vector<2x8x1xf32>
    %9 = arith.divf %7, %8 : vector<2x8x1xf32>
    %10 = vector.broadcast %9 : vector<2x8x1xf32> to vector<2x8x256xf32>
    %11 = arith.subf %0, %10 : vector<2x8x256xf32>
    %12 = arith.mulf %11, %11 : vector<2x8x256xf32>
    %cst_9 = arith.constant dense<0.000000e+00> : vector<2x8xf32>
    %13 = vector.multi_reduction <add>, %12, %cst_9 [2] : vector<2x8x256xf32> to vector<2x8xf32>
    %14 = vector.shape_cast %13 : vector<2x8xf32> to vector<2x8x1xf32>
    %cst_10 = arith.constant 2.560000e+02 : f32
    %15 = vector.broadcast %cst_10 : f32 to vector<2x8x1xf32>
    %16 = arith.divf %14, %15 : vector<2x8x1xf32>
    %cst_11 = arith.constant 9.99999974E-6 : f32
    %17 = vector.broadcast %cst_11 : f32 to vector<2x8x1xf32>
    %18 = arith.addf %16, %17 : vector<2x8x1xf32>
    %19 = math.rsqrt %18 : vector<2x8x1xf32>
    %20 = vector.broadcast %19 : vector<2x8x1xf32> to vector<2x8x256xf32>
    %21 = arith.mulf %11, %20 : vector<2x8x256xf32>
    %22 = vector.broadcast %4 : vector<1x1x256xf32> to vector<2x8x256xf32>
    %23 = arith.mulf %21, %22 : vector<2x8x256xf32>
    %24 = vector.broadcast %5 : vector<1x1x256xf32> to vector<2x8x256xf32>
    %25 = arith.addf %23, %24 : vector<2x8x256xf32>
    %cst_12 = arith.constant dense<0.000000e+00> : vector<1xf32>
    %26 = vector.multi_reduction <add>, %1, %cst_12 [1] : vector<1x256xf32> to vector<1xf32>
    %27 = vector.shape_cast %26 : vector<1xf32> to vector<1x1xf32>
    %cst_13 = arith.constant 2.560000e+02 : f32
    %28 = vector.broadcast %cst_13 : f32 to vector<1x1xf32>
    %29 = arith.divf %27, %28 : vector<1x1xf32>
    %30 = vector.broadcast %29 : vector<1x1xf32> to vector<1x256xf32>
    %31 = arith.subf %1, %30 : vector<1x256xf32>
    %32 = arith.mulf %31, %31 : vector<1x256xf32>
    %cst_14 = arith.constant dense<0.000000e+00> : vector<1xf32>
    %33 = vector.multi_reduction <add>, %32, %cst_14 [1] : vector<1x256xf32> to vector<1xf32>
    %34 = vector.shape_cast %33 : vector<1xf32> to vector<1x1xf32>
    %cst_15 = arith.constant 2.560000e+02 : f32
    %35 = vector.broadcast %cst_15 : f32 to vector<1x1xf32>
    %36 = arith.divf %34, %35 : vector<1x1xf32>
    %cst_16 = arith.constant 9.99999974E-6 : f32
    %37 = vector.broadcast %cst_16 : f32 to vector<1x1xf32>
    %38 = arith.addf %36, %37 : vector<1x1xf32>
    %39 = math.rsqrt %38 : vector<1x1xf32>
    %40 = vector.broadcast %39 : vector<1x1xf32> to vector<1x256xf32>
    %41 = arith.mulf %31, %40 : vector<1x256xf32>
    %42 = arith.mulf %41, %2 : vector<1x256xf32>
    %43 = arith.addf %42, %3 : vector<1x256xf32>
    %44 = vector.shape_cast %25 : vector<2x8x256xf32> to vector<16x256xf32>
    %45 = arith.truncf %44 : vector<16x256xf32> to vector<16x256xbf16>
    %c0_17 = arith.constant 0 : index
    %c0_18 = arith.constant 0 : index
    %46 = vector.load %arg6[%c0_17, %c0_18] : memref<256x768xbf16, #tpu.memory_space<vmem>>, vector<256x768xbf16>
    %cst_19 = arith.constant dense<0.000000e+00> : vector<16x768xf32>
    %47 = tpu.matmul %45, %46, %cst_19 {dimension_numbers = #tpu.dot_dimension_numbers<[1], [0], [0], [1], [0, 0, 1, 1], [], []>} : vector<16x256xbf16>, vector<256x768xbf16>, vector<16x768xf32> -> vector<16x768xf32>
    %48 = vector.shape_cast %47 : vector<16x768xf32> to vector<2x8x768xf32>
    %49 = arith.truncf %43 : vector<1x256xf32> to vector<1x256xbf16>
    %c0_20 = arith.constant 0 : index
    %c0_21 = arith.constant 0 : index
    %50 = vector.load %arg6[%c0_20, %c0_21] : memref<256x768xbf16, #tpu.memory_space<vmem>>, vector<256x768xbf16>
    %cst_22 = arith.constant dense<0.000000e+00> : vector<1x768xf32>
    %51 = tpu.matmul %49, %50, %cst_22 {dimension_numbers = #tpu.dot_dimension_numbers<[1], [0], [0], [1], [0, 0, 1, 1], [], []>} : vector<1x256xbf16>, vector<256x768xbf16>, vector<1x768xf32> -> vector<1x768xf32>
    %52 = vector.extract_strided_slice %48 {offsets = [0, 0, 0], sizes = [2, 8, 256], strides = [1, 1, 1]} : vector<2x8x768xf32> to vector<2x8x256xf32>
    %53 = vector.extract_strided_slice %48 {offsets = [0, 0, 256], sizes = [2, 8, 256], strides = [1, 1, 1]} : vector<2x8x768xf32> to vector<2x8x256xf32>
    %54 = vector.extract_strided_slice %48 {offsets = [0, 0, 512], sizes = [2, 8, 256], strides = [1, 1, 1]} : vector<2x8x768xf32> to vector<2x8x256xf32>
    %55 = arith.truncf %52 : vector<2x8x256xf32> to vector<2x8x256xbf16>
    %56 = arith.truncf %53 : vector<2x8x256xf32> to vector<2x8x256xbf16>
    %57 = vector.extract_strided_slice %51 {offsets = [0, 0], sizes = [1, 256], strides = [1, 1]} : vector<1x768xf32> to vector<1x256xf32>
    %58 = vector.extract_strided_slice %51 {offsets = [0, 256], sizes = [1, 256], strides = [1, 1]} : vector<1x768xf32> to vector<1x256xf32>
    %59 = vector.extract_strided_slice %51 {offsets = [0, 512], sizes = [1, 256], strides = [1, 1]} : vector<1x768xf32> to vector<1x256xf32>
    "tpu.trace_start"() <{level = 10 : i32, message = "bid,bjd->bij"}> : () -> ()
    %cst_23 = arith.constant dense<0.000000e+00> : vector<2x8x8xf32>
    %60 = tpu.matmul %55, %56, %cst_23 {dimension_numbers = #tpu.dot_dimension_numbers<[2], [2], [1], [1], [0, 0, 0, 1, 1, 1], [0], [0]>} : vector<2x8x256xbf16>, vector<2x8x256xbf16>, vector<2x8x8xf32> -> vector<2x8x8xf32>
    "tpu.trace_stop"() : () -> ()
    %cst_24 = arith.constant 6.250000e-02 : f32
    %61 = vector.broadcast %cst_24 : f32 to vector<2x8x8xf32>
    %62 = arith.mulf %60, %61 : vector<2x8x8xf32>
    %63 = vector.shape_cast %58 : vector<1x256xf32> to vector<1x1x256xf32>
    %64 = vector.broadcast %63 : vector<1x1x256xf32> to vector<2x8x256xf32>
    %65 = arith.mulf %52, %64 : vector<2x8x256xf32>
    %cst_25 = arith.constant dense<0.000000e+00> : vector<2x8xf32>
    %66 = vector.multi_reduction <add>, %65, %cst_25 [2] : vector<2x8x256xf32> to vector<2x8xf32>
    %67 = vector.shape_cast %66 : vector<2x8xf32> to vector<2x8x1xf32>
    %cst_26 = arith.constant 6.250000e-02 : f32
    %68 = vector.broadcast %cst_26 : f32 to vector<2x8x1xf32>
    %69 = arith.mulf %67, %68 : vector<2x8x1xf32>
    %70 = vector.shape_cast %57 : vector<1x256xf32> to vector<1x1x256xf32>
    %71 = vector.broadcast %70 : vector<1x1x256xf32> to vector<2x8x256xf32>
    %72 = arith.mulf %53, %71 : vector<2x8x256xf32>
    %cst_27 = arith.constant dense<0.000000e+00> : vector<2x8xf32>
    %73 = vector.multi_reduction <add>, %72, %cst_27 [2] : vector<2x8x256xf32> to vector<2x8xf32>
    %74 = vector.shape_cast %73 : vector<2x8xf32> to vector<2x8x1xf32>
    %cst_28 = arith.constant 6.250000e-02 : f32
    %75 = vector.broadcast %cst_28 : f32 to vector<2x8x1xf32>
    %76 = arith.mulf %74, %75 : vector<2x8x1xf32>
    %77 = arith.mulf %57, %58 : vector<1x256xf32>
    %cst_29 = arith.constant dense<0.000000e+00> : vector<1xf32>
    %78 = vector.multi_reduction <add>, %77, %cst_29 [1] : vector<1x256xf32> to vector<1xf32>
    %79 = vector.shape_cast %78 : vector<1xf32> to vector<1x1xf32>
    %cst_30 = arith.constant 6.250000e-02 : f32
    %80 = vector.broadcast %cst_30 : f32 to vector<1x1xf32>
    %81 = arith.mulf %79, %80 : vector<1x1xf32>
    %cst_31 = arith.constant dense<0xFF800000> : vector<2x8xf32>
    %82 = vector.multi_reduction <maximumf>, %62, %cst_31 [2] : vector<2x8x8xf32> to vector<2x8xf32>
    %83 = vector.shape_cast %82 : vector<2x8xf32> to vector<2x8x1xf32>
    %84 = arith.maximumf %83, %69 : vector<2x8x1xf32>
    %85 = vector.broadcast %84 : vector<2x8x1xf32> to vector<2x8x8xf32>
    %86 = arith.subf %62, %85 : vector<2x8x8xf32>
    %87 = math.exp %86 : vector<2x8x8xf32>
    %88 = arith.subf %69, %84 : vector<2x8x1xf32>
    %89 = math.exp %88 : vector<2x8x1xf32>
    %cst_32 = arith.constant dense<0.000000e+00> : vector<2x8xf32>
    %90 = vector.multi_reduction <add>, %87, %cst_32 [2] : vector<2x8x8xf32> to vector<2x8xf32>
    %91 = vector.shape_cast %90 : vector<2x8xf32> to vector<2x8x1xf32>
    %92 = arith.addf %91, %89 : vector<2x8x1xf32>
    %93 = tpu.reciprocal %92 {approx = true} : vector<2x8x1xf32> -> vector<2x8x1xf32>
    %94 = arith.truncf %87 : vector<2x8x8xf32> to vector<2x8x8xbf16>
    %95 = arith.truncf %54 : vector<2x8x256xf32> to vector<2x8x256xbf16>
    "tpu.trace_start"() <{level = 10 : i32, message = "bij,bjd->bid"}> : () -> ()
    %cst_33 = arith.constant dense<0.000000e+00> : vector<2x8x256xf32>
    %96 = tpu.matmul %94, %95, %cst_33 {dimension_numbers = #tpu.dot_dimension_numbers<[2], [1], [1], [2], [0, 0, 0, 1, 1, 2], [0], [0]>} : vector<2x8x8xbf16>, vector<2x8x256xbf16>, vector<2x8x256xf32> -> vector<2x8x256xf32>
    "tpu.trace_stop"() : () -> ()
    %97 = vector.shape_cast %59 : vector<1x256xf32> to vector<1x1x256xf32>
    %98 = vector.broadcast %89 : vector<2x8x1xf32> to vector<2x8x256xf32>
    %99 = vector.broadcast %97 : vector<1x1x256xf32> to vector<2x8x256xf32>
    %100 = arith.mulf %98, %99 : vector<2x8x256xf32>
    %101 = arith.addf %96, %100 : vector<2x8x256xf32>
    %102 = vector.broadcast %93 : vector<2x8x1xf32> to vector<2x8x256xf32>
    %103 = arith.mulf %101, %102 : vector<2x8x256xf32>
    %104 = arith.addf %103, %25 : vector<2x8x256xf32>
    %cst_34 = arith.constant dense<0xFF800000> : vector<2x1xf32>
    %105 = vector.multi_reduction <maximumf>, %76, %cst_34 [1] : vector<2x8x1xf32> to vector<2x1xf32>
    %106 = vector.shape_cast %105 : vector<2x1xf32> to vector<2x1x1xf32>
    %107 = vector.shape_cast %81 : vector<1x1xf32> to vector<1x1x1xf32>
    %108 = vector.broadcast %107 : vector<1x1x1xf32> to vector<2x1x1xf32>
    %109 = arith.maximumf %106, %108 : vector<2x1x1xf32>
    %110 = vector.broadcast %109 : vector<2x1x1xf32> to vector<2x8x1xf32>
    %111 = arith.subf %76, %110 : vector<2x8x1xf32>
    %112 = math.exp %111 : vector<2x8x1xf32>
    %113 = vector.shape_cast %81 : vector<1x1xf32> to vector<1x1x1xf32>
    %114 = vector.broadcast %113 : vector<1x1x1xf32> to vector<2x1x1xf32>
    %115 = arith.subf %114, %109 : vector<2x1x1xf32>
    %116 = math.exp %115 : vector<2x1x1xf32>
    %cst_35 = arith.constant dense<0.000000e+00> : vector<2x1xf32>
    %117 = vector.multi_reduction <add>, %112, %cst_35 [1] : vector<2x8x1xf32> to vector<2x1xf32>
    %118 = vector.shape_cast %117 : vector<2x1xf32> to vector<2x1x1xf32>
    %119 = arith.addf %118, %116 : vector<2x1x1xf32>
    %120 = tpu.reciprocal %119 {approx = true} : vector<2x1x1xf32> -> vector<2x1x1xf32>
    %121 = vector.broadcast %112 : vector<2x8x1xf32> to vector<2x8x256xf32>
    %122 = arith.mulf %121, %54 : vector<2x8x256xf32>
    %cst_36 = arith.constant dense<0.000000e+00> : vector<2x256xf32>
    %123 = vector.multi_reduction <add>, %122, %cst_36 [1] : vector<2x8x256xf32> to vector<2x256xf32>
    %124 = vector.shape_cast %123 : vector<2x256xf32> to vector<2x1x256xf32>
    %125 = vector.shape_cast %59 : vector<1x256xf32> to vector<1x1x256xf32>
    %126 = vector.broadcast %116 : vector<2x1x1xf32> to vector<2x1x256xf32>
    %127 = vector.broadcast %125 : vector<1x1x256xf32> to vector<2x1x256xf32>
    %128 = arith.mulf %126, %127 : vector<2x1x256xf32>
    %129 = arith.addf %124, %128 : vector<2x1x256xf32>
    %130 = vector.broadcast %120 : vector<2x1x1xf32> to vector<2x1x256xf32>
    %131 = arith.mulf %129, %130 : vector<2x1x256xf32>
    %132 = vector.shape_cast %43 : vector<1x256xf32> to vector<1x1x256xf32>
    %133 = vector.broadcast %132 : vector<1x1x256xf32> to vector<2x1x256xf32>
    %134 = arith.addf %131, %133 : vector<2x1x256xf32>
    %cst_37 = arith.constant dense<0.000000e+00> : vector<2x256xf32>
    %135 = vector.multi_reduction <add>, %104, %cst_37 [1] : vector<2x8x256xf32> to vector<2x256xf32>
    %cst_38 = arith.constant dense<0.000000e+00> : vector<2x256xf32>
    %136 = vector.multi_reduction <add>, %134, %cst_38 [1] : vector<2x1x256xf32> to vector<2x256xf32>
    %137 = arith.addf %135, %136 : vector<2x256xf32>
    %cst_39 = arith.constant dense<0.000000e+00> : vector<2x256xf32>
    %138 = vector.multi_reduction <add>, %0, %cst_39 [1] : vector<2x8x256xf32> to vector<2x256xf32>
    %139 = vector.broadcast %1 : vector<1x256xf32> to vector<2x256xf32>
    %140 = arith.addf %138, %139 : vector<2x256xf32>
    %141 = arith.truncf %137 : vector<2x256xf32> to vector<2x256xbf16>
    %c0_40 = arith.constant 0 : index
    %c0_41 = arith.constant 0 : index
    %142 = vector.load %arg7[%c0_40, %c0_41] : memref<256x256xbf16, #tpu.memory_space<vmem>>, vector<256x256xbf16>
    %cst_42 = arith.constant dense<0.000000e+00> : vector<2x256xf32>
    %143 = tpu.matmul %141, %142, %cst_42 {dimension_numbers = #tpu.dot_dimension_numbers<[1], [0], [0], [1], [0, 0, 1, 1], [], []>} : vector<2x256xbf16>, vector<256x256xbf16>, vector<2x256xf32> -> vector<2x256xf32>
    %c0_43 = arith.constant 0 : index
    %c0_44 = arith.constant 0 : index
    %144 = vector.load %arg8[%c0_43, %c0_44] : memref<1x256xf32, #tpu.memory_space<vmem>>, vector<1x256xf32>
    %cst_45 = arith.constant 9.000000e+00 : f32
    %145 = vector.broadcast %cst_45 : f32 to vector<1x256xf32>
    %146 = arith.mulf %145, %144 : vector<1x256xf32>
    %147 = vector.broadcast %146 : vector<1x256xf32> to vector<2x256xf32>
    %148 = arith.addf %143, %147 : vector<2x256xf32>
    %149 = arith.addf %148, %140 : vector<2x256xf32>
    %150 = arith.truncf %138 : vector<2x256xf32> to vector<2x256xbf16>
    %c0_46 = arith.constant 0 : index
    %c0_47 = arith.constant 0 : index
    %151 = vector.load %arg9[%c0_46, %c0_47] : memref<256x256xbf16, #tpu.memory_space<vmem>>, vector<256x256xbf16>
    %cst_48 = arith.constant dense<0.000000e+00> : vector<2x256xf32>
    %152 = tpu.matmul %150, %151, %cst_48 {dimension_numbers = #tpu.dot_dimension_numbers<[1], [0], [0], [1], [0, 0, 1, 1], [], []>} : vector<2x256xbf16>, vector<256x256xbf16>, vector<2x256xf32> -> vector<2x256xf32>
    %c0_49 = arith.constant 0 : index
    %c0_50 = arith.constant 0 : index
    %153 = vector.load %arg10[%c0_49, %c0_50] : memref<1x256xf32, #tpu.memory_space<vmem>>, vector<1x256xf32>
    %cst_51 = arith.constant 8.000000e+00 : f32
    %154 = vector.broadcast %cst_51 : f32 to vector<1x256xf32>
    %155 = arith.mulf %154, %153 : vector<1x256xf32>
    %156 = vector.broadcast %155 : vector<1x256xf32> to vector<2x256xf32>
    %157 = arith.addf %152, %156 : vector<2x256xf32>
    %c0_52 = arith.constant 0 : index
    %c0_53 = arith.constant 0 : index
    %c0_54 = arith.constant 0 : index
    %158 = vector.load %arg2[%c0_52, %c0_53, %c0_54] : memref<2x8x256xf32, #tpu.memory_space<vmem>>, vector<2x8x256xf32>
    %cst_55 = arith.constant dense<0.000000e+00> : vector<2x256xf32>
    %159 = vector.multi_reduction <add>, %158, %cst_55 [1] : vector<2x8x256xf32> to vector<2x256xf32>
    %cst_56 = arith.constant 8.000000e+00 : f32
    %160 = vector.broadcast %cst_56 : f32 to vector<2x256xf32>
    %161 = arith.mulf %160, %157 : vector<2x256xf32>
    %162 = arith.addf %149, %161 : vector<2x256xf32>
    %163 = arith.addf %162, %159 : vector<2x256xf32>
    %cst_57 = arith.constant 4.000000e-02 : f32
    %164 = vector.broadcast %cst_57 : f32 to vector<2x256xf32>
    %165 = arith.mulf %163, %164 : vector<2x256xf32>
    %c0_58 = arith.constant 0 : index
    %c0_59 = arith.constant 0 : index
    %166 = vector.load %arg11[%c0_58, %c0_59] : memref<1x256xf32, #tpu.memory_space<vmem>>, vector<1x256xf32>
    %c0_60 = arith.constant 0 : index
    %c0_61 = arith.constant 0 : index
    %167 = vector.load %arg12[%c0_60, %c0_61] : memref<1x256xf32, #tpu.memory_space<vmem>>, vector<1x256xf32>
    %cst_62 = arith.constant dense<0.000000e+00> : vector<2xf32>
    %168 = vector.multi_reduction <add>, %165, %cst_62 [1] : vector<2x256xf32> to vector<2xf32>
    %169 = vector.shape_cast %168 : vector<2xf32> to vector<2x1xf32>
    %cst_63 = arith.constant 2.560000e+02 : f32
    %170 = vector.broadcast %cst_63 : f32 to vector<2x1xf32>
    %171 = arith.divf %169, %170 : vector<2x1xf32>
    %172 = vector.broadcast %171 : vector<2x1xf32> to vector<2x256xf32>
    %173 = arith.subf %165, %172 : vector<2x256xf32>
    %174 = arith.mulf %173, %173 : vector<2x256xf32>
    %cst_64 = arith.constant dense<0.000000e+00> : vector<2xf32>
    %175 = vector.multi_reduction <add>, %174, %cst_64 [1] : vector<2x256xf32> to vector<2xf32>
    %176 = vector.shape_cast %175 : vector<2xf32> to vector<2x1xf32>
    %cst_65 = arith.constant 2.560000e+02 : f32
    %177 = vector.broadcast %cst_65 : f32 to vector<2x1xf32>
    %178 = arith.divf %176, %177 : vector<2x1xf32>
    %cst_66 = arith.constant 9.99999974E-6 : f32
    %179 = vector.broadcast %cst_66 : f32 to vector<2x1xf32>
    %180 = arith.addf %178, %179 : vector<2x1xf32>
    %181 = math.rsqrt %180 : vector<2x1xf32>
    %182 = vector.broadcast %181 : vector<2x1xf32> to vector<2x256xf32>
    %183 = arith.mulf %173, %182 : vector<2x256xf32>
    %184 = vector.broadcast %166 : vector<1x256xf32> to vector<2x256xf32>
    %185 = arith.mulf %183, %184 : vector<2x256xf32>
    %186 = vector.broadcast %167 : vector<1x256xf32> to vector<2x256xf32>
    %187 = arith.addf %185, %186 : vector<2x256xf32>
    %c0_67 = arith.constant 0 : index
    %c0_68 = arith.constant 0 : index
    %188 = vector.load %arg13[%c0_67, %c0_68] : memref<256x128xf32, #tpu.memory_space<vmem>>, vector<256x128xf32>
    %cst_69 = arith.constant dense<0.000000e+00> : vector<2x128xf32>
    %189 = tpu.matmul %187, %188, %cst_69 {dimension_numbers = #tpu.dot_dimension_numbers<[1], [0], [0], [1], [0, 0, 1, 1], [], []>} : vector<2x256xf32>, vector<256x128xf32>, vector<2x128xf32> -> vector<2x128xf32>
    %c0_70 = arith.constant 0 : index
    %c0_71 = arith.constant 0 : index
    %190 = vector.load %arg14[%c0_70, %c0_71] : memref<1x128xf32, #tpu.memory_space<vmem>>, vector<1x128xf32>
    %191 = vector.broadcast %190 : vector<1x128xf32> to vector<2x128xf32>
    %192 = arith.addf %189, %191 : vector<2x128xf32>
    %c0_72 = arith.constant 0 : index
    %c0_73 = arith.constant 0 : index
    %c0_74 = arith.constant 0 : index
    %193 = vector.load %arg15[%c0_72, %c0_73, %c0_74] : memref<1x2x128xf32, #tpu.memory_space<vmem>>, vector<1x2x128xf32>
    %194 = vector.shape_cast %193 : vector<1x2x128xf32> to vector<2x128xf32>
    %195 = vector.shape_cast %192 : vector<2x128xf32> to vector<1x2x128xf32>
    tpu.vector_store %arg15[%c0_72, %c0_73, %c0_74], %195 {strides = array<i32>} : memref<1x2x128xf32, #tpu.memory_space<vmem>>, vector<1x2x128xf32>,
    return
  }
  func.func @transform_0(%arg0: i32) -> (i32, i32, i32) {
    %c0_i32 = arith.constant 0 : i32
    %c0_i32_0 = arith.constant 0 : i32
    %c0_i32_1 = arith.constant 0 : i32
    return %arg0, %c0_i32, %c0_i32_0 : i32, i32, i32
  }
  func.func @transform_1(%arg0: i32) -> (i32, i32, i32) {
    %c0_i32 = arith.constant 0 : i32
    %c0_i32_0 = arith.constant 0 : i32
    %c0_i32_1 = arith.constant 0 : i32
    return %arg0, %c0_i32, %c0_i32_0 : i32, i32, i32
  }
  func.func @transform_2(%arg0: i32) -> (i32, i32) {
    %c0_i32 = arith.constant 0 : i32
    %c0_i32_0 = arith.constant 0 : i32
    %c0_i32_1 = arith.constant 0 : i32
    return %c0_i32, %c0_i32_0 : i32, i32
  }
  func.func @transform_3(%arg0: i32) -> (i32, i32) {
    %c0_i32 = arith.constant 0 : i32
    %c0_i32_0 = arith.constant 0 : i32
    %c0_i32_1 = arith.constant 0 : i32
    return %c0_i32, %c0_i32_0 : i32, i32
  }
  func.func @transform_4(%arg0: i32) -> (i32, i32) {
    %c0_i32 = arith.constant 0 : i32
    %c0_i32_0 = arith.constant 0 : i32
    %c0_i32_1 = arith.constant 0 : i32
    return %c0_i32, %c0_i32_0 : i32, i32
  }
  func.func @transform_5(%arg0: i32) -> (i32, i32) {
    %c0_i32 = arith.constant 0 : i32
    %c0_i32_0 = arith.constant 0 : i32
    %c0_i32_1 = arith.constant 0 : i32
    return %c0_i32, %c0_i32_0 : i32, i32
  }
  func.func @transform_6(%arg0: i32) -> (i32, i32) {
    %c0_i32 = arith.constant 0 : i32
    %c0_i32_0 = arith.constant 0 : i32
    %c0_i32_1 = arith.constant 0 : i32
    return %c0_i32, %c0_i32_0 : i32, i32
  }
  func.func @transform_7(%arg0: i32) -> (i32, i32) {
    %c0_i32 = arith.constant 0 : i32
    %c0_i32_0 = arith.constant 0 : i32
    %c0_i32_1 = arith.constant 0 : i32
    return %c0_i32, %c0_i32_0 : i32, i32
  }
  func.func @transform_8(%arg0: i32) -> (i32, i32) {
    %c0_i32 = arith.constant 0 : i32
    %c0_i32_0 = arith.constant 0 : i32
    %c0_i32_1 = arith.constant 0 : i32
    return %c0_i32, %c0_i32_0 : i32, i32
  }
  func.func @transform_9(%arg0: i32) -> (i32, i32) {
    %c0_i32 = arith.constant 0 : i32
    %c0_i32_0 = arith.constant 0 : i32
    %c0_i32_1 = arith.constant 0 : i32
    return %c0_i32, %c0_i32_0 : i32, i32
  }
  func.func @transform_10(%arg0: i32) -> (i32, i32) {
    %c0_i32 = arith.constant 0 : i32
    %c0_i32_0 = arith.constant 0 : i32
    %c0_i32_1 = arith.constant 0 : i32
    return %c0_i32, %c0_i32_0 : i32, i32
  }
  func.func @transform_11(%arg0: i32) -> (i32, i32) {
    %c0_i32 = arith.constant 0 : i32
    %c0_i32_0 = arith.constant 0 : i32
    %c0_i32_1 = arith.constant 0 : i32
    return %c0_i32, %c0_i32_0 : i32, i32
  }
  func.func @transform_12(%arg0: i32) -> (i32, i32) {
    %c0_i32 = arith.constant 0 : i32
    %c0_i32_0 = arith.constant 0 : i32
    %c0_i32_1 = arith.constant 0 : i32
    return %c0_i32, %c0_i32_0 : i32, i32
  }
  func.func @transform_13(%arg0: i32) -> (i32, i32) {
    %c0_i32 = arith.constant 0 : i32
    %c0_i32_0 = arith.constant 0 : i32
    %c0_i32_1 = arith.constant 0 : i32
    return %c0_i32, %c0_i32_0 : i32, i32
  }
  func.func @transform_14(%arg0: i32) -> (i32, i32, i32) {
    %c0_i32 = arith.constant 0 : i32
    %c0_i32_0 = arith.constant 0 : i32
    %c0_i32_1 = arith.constant 0 : i32
    return %arg0, %c0_i32, %c0_i32_0 : i32, i32, i32
  }
}

</mosaic_0001>

<bundles_post_ra>
// kernel: _f_to_f_padded.1
= control target key start
LH: loop header
LB: loop body
LE: loop exit
PB: predicated region body
PF: predicated region fallthrough
CT: control target
= control target key end

     0   :  { %s4986_s0 = inlined_call_operand.hbm [shape: f32[4,8,256], index: 0, kind: input, shape index: {}]   ;;  %s4987_s1 = inlined_call_operand.hbm [shape: f32[4,8,256], index: 1, kind: input, shape index: {}]   ;;  %s4988_s2 = inlined_call_operand.vmem [shape: f32[1,256], index: 2, kind: input, shape index: {}]   ;;  %s4989_s3 = inlined_call_operand.vmem [shape: f32[1,256], index: 3, kind: input, shape index: {}]   ;;  %s4990_s4 = inlined_call_operand.vmem [shape: f32[1,256], index: 4, kind: input, shape index: {}]   ;;  %s4991_s5 = inlined_call_operand.hbm [shape: bf16[256,768], index: 5, kind: input, shape index: {}]   ;;  %s4992_s6 = inlined_call_operand.hbm [shape: bf16[256,256], index: 6, kind: input, shape index: {}]   ;;  %s4993_s7 = inlined_call_operand.hbm [shape: f32[1,256], index: 7, kind: input, shape index: {}]   ;;  %s4994_s8 = inlined_call_operand.hbm [shape: bf16[256,256], index: 8, kind: input, shape index: {}]   ;;  %s4995_s9 = inlined_call_operand.hbm [shape: f32[1,256], index: 9, kind: input, shape index: {}]   ;;  %s4996_s10 = inlined_call_operand.vmem [shape: f32[1,256], index: 10, kind: input, shape index: {}]   ;;  %s4997_s11 = inlined_call_operand.vmem [shape: f32[1,256], index: 11, kind: input, shape index: {}]   ;;  %s4998_s12 = inlined_call_operand.hbm [shape: f32[256,128], index: 12, kind: input, shape index: {}]   ;;  %s4999_s13 = inlined_call_operand.hbm [shape: f32[1,128], index: 13, kind: input, shape index: {}]   ;;  %s5000_s14 = inlined_call_operand.hbm [shape: f32[2,2,128], index: 14, kind: output, shape index: {}]  }
   0x1   :  { %5036 = sst [smem:[#allocation54_spill]] %s4986_s0 }
   0x2   :  { %5037 = sst [smem:[#allocation55_spill]] %s4991_s5 }
   0x3   :  { %5038 = sst [smem:[#allocation56_spill]] %s4992_s6 }
   0x4   :  { %5039 = sst [smem:[#allocation57_spill]] %s4993_s7 }
   0x5   :  { %5040 = sst [smem:[#allocation58_spill]] %s4994_s8 }
   0x6   :  { %5041 = sst [smem:[#allocation59_spill]] %s4995_s9 }
   0x7   :  { %5042 = sst [smem:[#allocation60_spill]] %s4997_s11 }
   0x8   :  { %5043 = sst [smem:[#allocation61_spill]] %s4998_s12 }
   0x9   :  { %5044 = sst [smem:[#allocation62_spill]] %s4999_s13 }
   0xa   :  { %5045 = sst [smem:[#allocation63_spill]] %s5000_s14 }
   0xb   :  { %19 = vsyncpa [#allocation3], 0 }
   0xc   :  { %21 = vsyncpa [#allocation3 + $0x1], 0 }
   0xd   :  { %22 = vsyncpa [#allocation6], 0 }
   0xe   :  { %24 = vsyncpa [#allocation6 + $0x1], 0 }
   0xf   :  { %25 = vsyncpa [#allocation9], 0 }
  0x10   :  { %26 = vsyncpa [#allocation12], 0 }
  0x11   :  { %27 = vsyncpa [#allocation15], 0 }
  0x12   :  { %28 = vsyncpa [#allocation4], 0 }
  0x13   :  { %30 = vsyncpa [#allocation4 + $0x1], 0  ;;  %s4020_s29 = smov 0   ;;  %s4022_s30 = smov 0  }
  0x14   :  { %s4024_s15 = smov 0   ;;  %s4026_s16 = smov 0  }
  0x15 LB: > { %s3928_s17 = smov [#allocation7]   ;;  %s4041_s19 = sadd.s32 4294967295, %s3926_s16   ;;  %s3926_s16 = sphi %s4026_s16, %s5138_s16   ;;  %s3922_s15 = sphi %s4024_s15, %s5137_s15   ;;  %s3918_s30 = sphi %s4022_s30, %s5136_s30   ;;  %s3914_s29 = sphi %s4020_s29, %s5135_s29  }
  0x16   : > { %s392_s18 = sshll.u32 %s3928_s17, 4  ;;  %p2963_p0 = scmp.ge.s32.totalorder %s3926_s16, 1  ;;  %s393_s18 = int_to_ptr.vmem [resolvable:$true] %s392_s18 }
  0x17   : > { %p5002_p1 = scmp.eq.s32.totalorder %s4041_s19, 0  ;;  %p371_p2 = scmp.lt.s32.totalorder %s3926_s16, 3 }
  0x18   : > { %s3929_s21 = smov [#allocation8]   ;;  %s3930_s24 = smov [#allocation11]  }
  0x19   : > { %p4046_p3 = pnand %p2963_p0, %p371_p2  ;;  %s405_s22 = sshll.u32 %s3929_s21, 4  ;;  %s4059_s22 = int_to_ptr.vmem [resolvable:$true] %s405_s22 }
  0x1a   : > { %s4061_s25 = sshll.u32 %s3930_s24, 4  ;;  %s3615_s27 = scalar_lea.vmem %s393_s18, 12288  ;;  %s430_s25 = int_to_ptr.vmem [resolvable:$true] %s4061_s25 }
  0x1b   : > { %p3233_p5 = pneg %p4046_p3  ;;  %p3616_p8 = scmp.ne.s32.totalorder %s393_s18, %s3615_s27 }
  0x1c   : > { %p3623_p11 = scmp.lt.s32.totalorder %s393_s18, %s393_s18  ;;  %p3624_p12 = scmp.lt.s32.totalorder %s3615_s27, %s3615_s27 }
  0x1d   : > { %p4055_p6 = pnand %p3233_p5, %p5002_p1 }
  0x1e   : > { %p3625_p13 = por %p3624_p12, %p3623_p11 }
  0x1f   : > { %p4065_p7 = pneg %p4055_p6 }
  0x21   : > { %p3618_p9 = pnand %p3616_p8, %p4065_p7 }
  0x23   : > { %p3619_p10 = pneg %p3618_p9 }
  0x25   : > { %p3626_p0 = pnand %p3625_p13, %p3619_p10 }
  0x27   : > { %3629 = shalt.err (!%p3626_p0)
}
  0x28   : > { %s3931_s28 = smov 384   ;;  %s3932_s17 = smov 24  }
  0x29   : > { %s5049_s5 = sld [smem:[#allocation55_spill]]  ;;  %s3641_s14 = scalar_lea.vmem %s4059_s22, 4096 }
  0x2a   : > { %p3642_p2 = scmp.ne.s32.totalorder %s4059_s22, %s3641_s14  ;;  %p3649_p9 = scmp.lt.s32.totalorder %s4059_s22, %s4059_s22 }
  0x2b   : > { %p3650_p10 = scmp.lt.s32.totalorder %s3641_s14, %s3641_s14 }
  0x2c   : > { %p3644_p5 = pnand %p3642_p2, %p4065_p7 }
  0x2d   : > { %p3651_p11 = por %p3650_p10, %p3649_p9 }
  0x2e   : > { %p3645_p8 = pneg %p3644_p5 }
  0x2f   : > { %3236 = dma.hbm_to_vmem [thread:$0]  (!%p4055_p6), %s5049_s5, 12288, %s393_s18, [#allocation6], %s3931_s28, %s3931_s28, %s3932_s17  }
  0x30   : > { %p3652_p12 = pnand %p3651_p11, %p3645_p8 }
  0x32   : > { %3655 = shalt.err (!%p3652_p12)
}
  0x33   : > { %s3933_s27 = smov 128   ;;  %s3934_s11 = smov 8  }
  0x34   : > { %s5050_s6 = sld [smem:[#allocation56_spill]]  ;;  %s3667_s17 = scalar_lea.vmem %s430_s25, 4096 }
  0x35   : > { %p3668_p13 = scmp.ne.s32.totalorder %s430_s25, %s3667_s17  ;;  %p3675_p5 = scmp.lt.s32.totalorder %s430_s25, %s430_s25 }
  0x36   : > { %p3676_p8 = scmp.lt.s32.totalorder %s3667_s17, %s3667_s17 }
  0x37   : > { %p3670_p0 = pnand %p3668_p13, %p4065_p7 }
  0x38   : > { %p3677_p9 = por %p3676_p8, %p3675_p5 }
  0x39   : > { %p3671_p2 = pneg %p3670_p0 }
  0x3a   : > { %3239 = dma.hbm_to_vmem [thread:$0]  (!%p4055_p6), %s5050_s6, 4096, %s4059_s22, [#allocation9], %s3933_s27, %s3933_s27, %s3934_s11  }
  0x3b   : > { %p3678_p10 = pnand %p3677_p9, %p3671_p2 }
  0x3d   : > { %3681 = shalt.err (!%p3678_p10)
}
  0x3e   : > { %s5051_s8 = sld [smem:[#allocation58_spill]]  ;;  %s3935_s22 = smov [#allocation14]  }
  0x3f   : > { %s459_s24 = sshll.u32 %s3935_s22, 4  ;;  %s3936_s18 = smov [#allocation10]   ;;  %s460_s24 = int_to_ptr.vmem [resolvable:$true] %s459_s24 }
  0x40   : > { %s419_s28 = sshll.u32 %s3936_s18, 4  ;;  %s3693_s5 = scalar_lea.vmem %s460_s24, 4096  ;;  %s420_s28 = int_to_ptr.vmem [resolvable:$true] %s419_s28 }
  0x41   : > { %p3694_p11 = scmp.ne.s32.totalorder %s460_s24, %s3693_s5  ;;  %p3701_p0 = scmp.lt.s32.totalorder %s460_s24, %s460_s24 }
  0x42   : > { %p3702_p2 = scmp.lt.s32.totalorder %s3693_s5, %s3693_s5 }
  0x43   : > { %p3696_p12 = pnand %p3694_p11, %p4065_p7 }
  0x44   : > { %3245 = dma.hbm_to_vmem [thread:$0]  (!%p4055_p6), %s5051_s8, 4096, %s430_s25, [#allocation12], %s3933_s27, %s3933_s27, %s3934_s11  }
  0x45   : > { %p3697_p13 = pneg %p3696_p12  ;;  %p3703_p5 = por %p3702_p2, %p3701_p0 }
  0x47   : > { %p3704_p8 = pnand %p3703_p5, %p3697_p13 }
  0x49   : > { %3707 = shalt.err (!%p3704_p8)
}
  0x4a   : > { %s5052_s12 = sld [smem:[#allocation61_spill]]  ;;  %s3719_s14 = scalar_lea.vmem %s420_s28, 32 }
  0x4b   : > { %p3720_p9 = scmp.ne.s32.totalorder %s420_s28, %s3719_s14  ;;  %p3727_p12 = scmp.lt.s32.totalorder %s420_s28, %s420_s28 }
  0x4c   : > { %p3728_p0 = scmp.lt.s32.totalorder %s3719_s14, %s3719_s14 }
  0x4d   : > { %p3722_p10 = pnand %p3720_p9, %p4065_p7 }
  0x4e   : > { %p3729_p13 = por %p3728_p0, %p3727_p12 }
  0x4f   : > { %p3723_p11 = pneg %p3722_p10 }
  0x50   : > { %3251 = dma.hbm_to_vmem [thread:$0]  (!%p4055_p6), %s5052_s12, 4096, %s460_s24, [#allocation15], %s3933_s27, %s3933_s27, %s3934_s11  }
  0x51   : > { %p3730_p2 = pnand %p3729_p13, %p3723_p11 }
  0x53   : > { %3733 = shalt.err (!%p3730_p2)
}
  0x54   : > { %s5053_s7 = sld [smem:[#allocation57_spill]]  ;;  %s3937_s22 = smov [#allocation13]  }
  0x55   : > { %s443_s11 = sshll.u32 %s3937_s22, 4  ;;  %s3938_s27 = smov [#allocation16]   ;;  %s444_s11 = int_to_ptr.vmem [resolvable:$true] %s443_s11 }
  0x56   : > { %s473_s24 = sshll.u32 %s3938_s27, 4  ;;  %s3745_s18 = scalar_lea.vmem %s444_s11, 32  ;;  %s474_s24 = int_to_ptr.vmem [resolvable:$true] %s473_s24 }
  0x57   : > { %p3746_p5 = scmp.ne.s32.totalorder %s444_s11, %s3745_s18  ;;  %p3753_p10 = scmp.lt.s32.totalorder %s444_s11, %s444_s11 }
  0x58   : > { %p3754_p11 = scmp.lt.s32.totalorder %s3745_s18, %s3745_s18 }
  0x59   : > { %p3748_p8 = pnand %p3746_p5, %p4065_p7 }
  0x5a   : > { %3242 = dma.hbm_to_vmem [thread:$0]  (!%p4055_p6), %s5053_s7, 32, %s420_s28, [#allocation9]  }
  0x5b   : > { %p3749_p9 = pneg %p3748_p8  ;;  %p3755_p12 = por %p3754_p11, %p3753_p10 }
  0x5d   : > { %p3756_p0 = pnand %p3755_p12, %p3749_p9 }
  0x5f   : > { %3759 = shalt.err (!%p3756_p0)
}
  0x60   : > { %s5054_s9 = sld [smem:[#allocation59_spill]]  ;;  %s3771_s28 = scalar_lea.vmem %s474_s24, 16 }
  0x61   : > { %p3772_p13 = scmp.ne.s32.totalorder %s474_s24, %s3771_s28  ;;  %s3778_s14 = scalar_lea.vmem %s474_s24, 32 }
  0x62   : > { %p3779_p5 = scmp.lt.s32.totalorder %s474_s24, %s474_s24  ;;  %p3780_p8 = scmp.lt.s32.totalorder %s3778_s14, %s3771_s28 }
  0x63   : > { %p3774_p2 = pnand %p3772_p13, %p4065_p7 }
  0x64   : > { %p3781_p1 = por %p3780_p8, %p3779_p5 }
  0x65   : > { %p3775_p4 = pneg %p3774_p2 }
  0x66   : > { %3248 = dma.hbm_to_vmem [thread:$0]  (!%p4055_p6), %s5054_s9, 32, %s444_s11, [#allocation12]  }
  0x67   : > { %p3782_p10 = pnand %p3781_p1, %p3775_p4 }
  0x69   : > { %3785 = shalt.err (!%p3782_p10)
}
  0x6a   : > { %s5055_s13 = sld [smem:[#allocation62_spill]]  ;;  %s2962_s26 = sadd.s32 4294967294, %s3926_s16  }
  0x6b   : > { %s4135_s23 = sadd.s32 1, %s3926_s16   ;;  %s43_s22 = sadd.s32 1, %s3922_s15 }
  0x6c   : > { %s40_s11 = ssub.s32 %s3926_s16, %s4135_s23  ;;  %p50_p1 = scmp.ne.s32.totalorder %s3922_s15, %s3918_s30 }
  0x6d   : > { %p41_p4 = scmp.eq.s32.totalorder %s40_s11, 0  ;;  %p51_p7 = scmp.eq.s32.totalorder %s3926_s16, 0 }
  0x6e   : > { %p56_p9 = scmp.ne.s32.totalorder %s3918_s30, %s3914_s29  ;;  %p358_p11 = scmp.eq.s32.totalorder %s4041_s19, 1 }
  0x6f   : > { %s4147_s27 = scalar_select %p41_p4, %s3922_s15, %s43_s22  }
  0x70   : > { %3254 = dma.hbm_to_vmem [thread:$0]  (!%p4055_p6), %s5055_s13, 16, %s474_s24, [#allocation15]  }
  0x71   : > { %5056 = sst [smem:[#allocation25_spill]] %s4147_s27  ;;  %p52_p12 = por %p51_p7, %p50_p1 }
  0x72   : > { %p5057_p0 = scmp.eq.s32.totalorder %s4041_s19, 0  ;;  %p4155_p6 = por %p358_p11, %p50_p1 }
  0x73   : > { %p364_p2 = scmp.eq.s32.totalorder %s2962_s26, 1  ;;  %p3273_p5 = scmp.lt.s32.totalorder %s3926_s16, 2 }
  0x74   : > { %p4151_p13 = por %p5057_p0, %p56_p9  ;;  %s484_s25 = sand.u32 1, %s3922_s15  }
  0x75   : > { %s5059_s18 = scalar_select %p4155_p6, 1, 0 }
  0x76   : > { %s5058_s24 = scalar_select %p4151_p13, 1, 0 }
  0x77   : > { %p4161_p8 = por %p364_p2, %p56_p9  ;;  %s4165_s28 = sshll.u32 %s484_s25, 5 }
  0x78   : > { %s5003_s14 = sshll.u32 %s3926_s16, 9  ;;  %s5061_s0 = sld [smem:[#allocation54_spill]] }
  0x79   : > { %s5060_s17 = scalar_select %p4161_p8, 1, 0 }
  0x7a   : > { %s488_s26 = scalar_lea.vmem [#allocation2], %s4165_s28  ;;  %p4176_p10 = pnand %p3273_p5, %p52_p12 }
  0x7b   : > { %s496_s11 = sshll.u32 %s488_s26, 4  ;;  %s4182_s7 = scalar_lea.sflag [#allocation3], %s484_s25  ;;  %s4180_s11 = int_to_ptr.vmem [resolvable:$true] %s496_s11 }
  0x7c   : > { %p3788_p4 = pneg %p4176_p10 }
  0x7e   : > { %s4173_s22 = scalar_lea.hbm %s5061_s0, %s5003_s14  ;;  %s3791_s26 = scalar_lea.hbm %s5061_s0, 1024 }
  0x7f   : > { %s3786_s8 = scalar_lea.hbm %s4173_s22, 512  ;;  %p3792_p11 = scmp.lt.s32.totalorder %s4173_s22, %s5061_s0 }
  0x80   : > { %p3787_p1 = scmp.ne.s32.totalorder %s4173_s22, %s3786_s8  ;;  %p3793_p12 = scmp.lt.s32.totalorder %s3791_s26, %s3786_s8 }
  0x82   : > { %p3789_p7 = pnand %p3788_p4, %p3787_p1  ;;  %p3794_p0 = por %p3793_p12, %p3792_p11 }
  0x84   : > { %p3790_p9 = pneg %p3789_p7 }
  0x86   : > { %p3795_p2 = pnand %p3794_p0, %p3790_p9 }
  0x88   : > { %3798 = shalt.err (!%p3795_p2)
}
  0x89   : > { %s3799_s25 = scalar_lea.vmem %s4180_s11, 512  ;;  %s3939_s5 = smov [#allocation2]  }
  0x8a   : > { %p3800_p5 = scmp.ne.s32.totalorder %s4180_s11, %s3799_s25  ;;  %s3804_s21 = sshll.u32 %s3939_s5, 4  ;;  %s3805_s21 = int_to_ptr.vmem [resolvable:$false] %s3804_s21 }
  0x8b   : > { %s3806_s12 = scalar_lea.vmem %s3805_s21, 1024  ;;  %p3807_p8 = scmp.lt.s32.totalorder %s4180_s11, %s3805_s21 }
  0x8c   : > { %p3802_p1 = pnand %p3800_p5, %p3788_p4  ;;  %p3808_p6 = scmp.lt.s32.totalorder %s3806_s12, %s3799_s25 }
  0x8e   : > { %p3803_p7 = pneg %p3802_p1  ;;  %p3809_p13 = por %p3808_p6, %p3807_p8 }
  0x90   : > { %p3810_p11 = pnand %p3809_p13, %p3803_p7 }
  0x92   : > { %3813 = shalt.err (!%p3810_p11)
}
  0x93   : > { %s3940_s8 = smov 256   ;;  %s3941_s9 = smov 16  }
  0x94   : > { %3258 = dma.hbm_to_vmem [thread:$0]  (!%p4176_p10), %s4173_s22, 512, %s4180_s11, %s4182_s7, %s3940_s8, %s3940_s8, %s3941_s9  }
  0x95   : > { %s5063_s14 = sshll.u32 %s3926_s16, 9  ;;  %s510_s5 = scalar_lea.vmem [#allocation5], %s4165_s28 }
  0x96   : > { %s4217_s25 = scalar_lea.hbm %s4987_s1, %s5063_s14  ;;  %s518_s21 = sshll.u32 %s510_s5, 4  ;;  %s4221_s21 = int_to_ptr.vmem [resolvable:$true] %s518_s21 }
  0x97   : > { %s506_s0 = sand.u32 1, %s3926_s16   ;;  %s3814_s27 = scalar_lea.hbm %s4217_s25, 512 }
  0x98   : > { %s507_s13 = scalar_lea.sflag [#allocation6], %s506_s0  ;;  %p3815_p13 = scmp.ne.s32.totalorder %s4217_s25, %s3814_s27 }
  0x99   : > { %s3819_s11 = scalar_lea.hbm %s4987_s1, 1024  ;;  %p3820_p9 = scmp.lt.s32.totalorder %s4217_s25, %s4987_s1 }
  0x9a   : > { %p3817_p6 = pnand %p3815_p13, %p3788_p4  ;;  %p3821_p12 = scmp.lt.s32.totalorder %s3819_s11, %s3814_s27 }
  0x9c   : > { %p3818_p8 = pneg %p3817_p6  ;;  %p3822_p0 = por %p3821_p12, %p3820_p9 }
  0x9e   : > { %p3823_p2 = pnand %p3822_p0, %p3818_p8 }
  0xa0   : > { %3826 = shalt.err (!%p3823_p2)
}
  0xa1   : > { %s3827_s0 = scalar_lea.vmem %s4221_s21, 512  ;;  %s3942_s28 = smov [#allocation5]  }
  0xa2   : > { %p3828_p5 = scmp.ne.s32.totalorder %s4221_s21, %s3827_s0  ;;  %s3832_s26 = sshll.u32 %s3942_s28, 4  ;;  %s3833_s26 = int_to_ptr.vmem [resolvable:$false] %s3832_s26 }
  0xa3   : > { %s3834_s5 = scalar_lea.vmem %s3833_s26, 1024  ;;  %p3835_p11 = scmp.lt.s32.totalorder %s4221_s21, %s3833_s26 }
  0xa4   : > { %p3830_p1 = pnand %p3828_p5, %p3788_p4  ;;  %p3836_p13 = scmp.lt.s32.totalorder %s3834_s5, %s3827_s0 }
  0xa6   : > { %p3831_p7 = pneg %p3830_p1  ;;  %p3837_p6 = por %p3836_p13, %p3835_p11 }
  0xa8   : > { %p3838_p9 = pnand %p3837_p6, %p3831_p7 }
  0xaa   : > { %3841 = shalt.err (!%p3838_p9)
}
  0xab   : > { %3261 = dma.hbm_to_vmem [thread:$0]  (!%p4176_p10), %s4217_s25, 512, %s4221_s21, %s507_s13, %s3940_s8, %s3940_s8, %s3941_s9  }
  0xac   : > { %530 = sbr.rel (%p4046_p3) target bundleno = 2038 (0x7f6), region = 76 }
  0xb1   : > { %s4251_s27 = sand.u32 1, %s3918_s30   ;;  %p5064_p4 = scmp.ne.s32.totalorder %s5058_s24, 0 }
  0xb2   : > { %s2981_s7 = sshll.u32 %s4251_s27, 5  ;;  %s533_s22 = scalar_lea.sflag [#allocation3], %s4251_s27 }
  0xb3   : > { %s4255_s11 = scalar_lea.vmem [#allocation2], %s2981_s7 }
  0xb4   : > { %3885 = dma.done.wait (%p5064_p4), %s533_s22, 512  }
  0xb5   : > { %3887 = vsyncadd (%p5064_p4), %s533_s22, 4294966784  ;;  %s541_s6 = sand.u32 1, %s4041_s19   ;;  %s4262_s20 = scalar_lea.vmem [#allocation5], %s2981_s7 }
  0xb6   : > { %s542_s13 = scalar_lea.sflag [#allocation6], %s541_s6 }
  0xb7   : > { %3889 = dma.done.wait (%p5064_p4), %s542_s13, 512  }
  0xb8   : > { %3891 = vsyncadd (%p5064_p4), %s542_s13, 4294966784  ;;  %p5065_p3 = scmp.eq.s32.totalorder %s4041_s19, 0 }
  0xba   : > { %3893 = dma.done.wait (%p5065_p3), [#allocation6], 12288   ;;  %p5066_p10 = pmov %p5065_p3 }
  0xbb   : > { %p5067_p8 = pmov %p5065_p3 }
  0xbc   : > { %3895 = vsyncadd (%p5066_p10), [#allocation6], 4294955008 }
  0xbd   : > { %3897 = dma.done.wait (%p5067_p8), [#allocation9], 4128   ;;  %p5068_p12 = pmov %p5065_p3 }
  0xbe   : > { %p5069_p0 = pmov %p5065_p3 }
  0xbf   : > { %3899 = vsyncadd (%p5068_p12), [#allocation9], 4294963168 }
  0xc0   : > { %3901 = dma.done.wait (%p5069_p0), [#allocation12], 4128   ;;  %p5070_p2 = pmov %p5069_p0 }
  0xc1   : > { %p5071_p5 = pmov %p5069_p0 }
  0xc2   : > { %3903 = vsyncadd (%p5070_p2), [#allocation12], 4294963168 }
  0xc3   : > { %3905 = dma.done.wait (%p5071_p5), [#allocation15], 4112   ;;  %p5072_p1 = pmov %p5069_p0 }
  0xc4   : > { %v667_v0 = vlaneseq  ;;  %v4289_v4 = vld [vmem:[%s4255_s11] sm:$0xff]  ;;  %v4292_v5 = vld [vmem:[%s4255_s11 + $0x8] sm:$0xff]  ;;  %v4295_v6 = vld [vmem:[%s4255_s11 + $0x10] sm:$0xff]  ;;  %vm707_vm0 = vcmask 1040384   ;;  %vm1783_vm1 = vcmask 1043456   ;;  %vm1731_vm2 = vcmask 64512  }
  0xc5   : > { %3907 = vsyncadd (%p5072_p1), [#allocation15], 4294963184  ;;  %v633_v7 = vadd.f32 %v4292_v5, %v4289_v4  ;;  %v4300_v8 = vld [vmem:[%s4255_s11 + $0x18] sm:$0xff]  ;;  %v4305_v9 = vld [vmem:[%s4988_s2] sm:$0x3]  ;;  %vm2101_vm3 = vcmask 1041409  }
  0xc6   : > { %v668_v1 = vshrl.u32 %v667_v0, 7  ;;  %v636_v12 = vadd.f32 %v4300_v8, %v4295_v6  ;;  %v4321_v16 = vld [vmem:[#allocation7 + $0x154] ss:$24 sps:$4 sm:$0xff]   ;;  %v4325_v18 = vld [vmem:[#allocation7 + $0x150] ss:$24 sps:$4 sm:$0xff]   ;;  %vm2632_vm4 = vcmask 1041408  }
  0xc7   : > { %634 = vadd.xlane.f32.xlu0 %v633_v7  ;;  %v4323_v17 = vld [vmem:[#allocation7 + $0x15c] ss:$24 sps:$4 sm:$0xff]   ;;  %v4327_v19 = vld [vmem:[#allocation7 + $0x158] ss:$24 sps:$4 sm:$0xff]   ;;  %v4331_v21 = vld [vmem:[#allocation7 + $0x12c] ss:$24 sps:$4 sm:$0xff]   ;;  %1328 = vmatprep.subr.bf16.mxu0 %v4321_v16 }
  0xc8   : > { %v4284_v2 = vsub.s32 0, %v668_v1  ;;  %v4286_v3 = vsub.s32 1, %v668_v1  ;;  %v4329_v20 = vld [vmem:[#allocation7 + $0x124] ss:$24 sps:$4 sm:$0xff]   ;;  %1371 = vmatprep.subr.bf16.mxu1 %v4323_v17  ;;  %1329 = vmatpush1.bf16.msra.mxu0 %v4325_v18  ;;  %v4337_v22 = vld [vmem:[#allocation7 + $0x120] ss:$24 sps:$4 sm:$0xff]  }
  0xc9   : > { %1372 = vmatpush1.bf16.msra.mxu1 %v4327_v19  ;;  %v4339_v23 = vld [vmem:[#allocation7 + $0x128] ss:$24 sps:$4 sm:$0xff]   ;;  %1330 = vmatprep.subr.bf16.mxu0 %v4329_v20  ;;  %v4343_v24 = vld [vmem:[#allocation7 + $0xf4] ss:$24 sps:$4 sm:$0xff]   ;;  %v4351_v27 = vld [vmem:[#allocation7 + $0xf8] ss:$24 sps:$4 sm:$0xff]  }
  0xca   : > { %v4309_v10 = vrot.slane %v4305_v9, %v4284_v2  ;;  %v4313_v11 = vrot.slane %v4305_v9, %v4286_v3  ;;  %1373 = vmatprep.subr.bf16.mxu1 %v4331_v21  ;;  %v4345_v25 = vld [vmem:[#allocation7 + $0xfc] ss:$24 sps:$4 sm:$0xff]   ;;  %v4349_v26 = vld [vmem:[#allocation7 + $0xf0] ss:$24 sps:$4 sm:$0xff]   ;;  %v4357_v29 = vld [vmem:[#allocation7 + $0xcc] ss:$24 sps:$4 sm:$0xff]  }
  0xcb   : > { %637 = vadd.xlane.f32.xlu0 %v636_v12  ;;  %v4355_v28 = vld [vmem:[#allocation7 + $0xc4] ss:$24 sps:$4 sm:$0xff]   ;;  %5075 = vst [vmem:[#allocation28_spill] sm:$0xff] %v4357_v29  ;;  %v4359_v30 = vld [vmem:[#allocation7 + $0xc0] ss:$24 sps:$4 sm:$0xff]   ;;  %s5129_s5 = sld [smem:[#allocation60_spill]] }
  0xcc   : > { %5073 = vst [vmem:[#allocation26_spill] sm:$0xff] %v4309_v10  ;;  %5074 = vst [vmem:[#allocation27_spill] sm:$0xff] %v4313_v11  ;;  %v708_v13 = vsel %vm707_vm0, %v4309_v10, 0.0  ;;  %v709_v14 = vsel %vm707_vm0, %v4313_v11, 0.0  ;;  %1331 = vmatpush1.bf16.msra.mxu0 %v4337_v22  ;;  %v4363_v31 = vld [vmem:[#allocation7 + $0xc8] ss:$24 sps:$4 sm:$0xff]  }
  0xcd   : > { %v710_v15 = vadd.f32 %v709_v14, %v708_v13  ;;  %1374 = vmatpush1.bf16.msra.mxu1 %v4339_v23  ;;  %1332 = vmatprep.subr.bf16.mxu0 %v4343_v24  ;;  %5076 = vst [vmem:[#allocation29_spill] sm:$0xff] %v4363_v31  ;;  %v4365_v32 = vld [vmem:[#allocation7 + $0x94] ss:$24 sps:$4 sm:$0xff]   ;;  %v4371_v34 = vld [vmem:[#allocation7 + $0x90] ss:$24 sps:$4 sm:$0xff]   ;;  %s2990_s7 = sshll.u32 %s4251_s27, 1 }
  0xce   : > { %1375 = vmatprep.subr.bf16.mxu1 %v4345_v25  ;;  %v4367_v33 = vld [vmem:[#allocation7 + $0x9c] ss:$24 sps:$4 sm:$0xff]   ;;  %v4373_v35 = vld [vmem:[#allocation7 + $0x98] ss:$24 sps:$4 sm:$0xff]   ;;  %v4377_v37 = vld [vmem:[#allocation7 + $0x6c] ss:$24 sps:$4 sm:$0xff]  }
  0xcf   : > { %711 = vadd.xlane.f32.xlu0 %v710_v15  ;;  %5077 = vst [vmem:[#allocation30_spill] sm:$0xff] %v4367_v33  ;;  %5078 = vst [vmem:[#allocation31_spill] sm:$0xff] %v4373_v35  ;;  %v4375_v36 = vld [vmem:[#allocation7 + $0x64] ss:$24 sps:$4 sm:$0xff]   ;;  %v4383_v38 = vld [vmem:[#allocation7 + $0x60] ss:$24 sps:$4 sm:$0xff]  }
  0xd0   : > { %1333 = vmatpush1.bf16.msra.mxu0 %v4349_v26  ;;  %5079 = vst [vmem:[#allocation32_spill] sm:$0xff] %v4377_v37  ;;  %v4385_v39 = vld [vmem:[#allocation7 + $0x68] ss:$24 sps:$4 sm:$0xff]   ;;  %v4387_v40 = vld [vmem:[#allocation7 + $0x34] ss:$24 sps:$4 sm:$0xff]   ;;  %s3157_s22 = sshll.u32 %s4041_s19, 5 }
  0xd1   : > { %1376 = vmatpush1.bf16.msra.mxu1 %v4351_v27  ;;  %1334 = vmatprep.subr.bf16.mxu0 %v4355_v28  ;;  %5080 = vst [vmem:[#allocation33_spill] sm:$0xff] %v4385_v39  ;;  %v4389_v41 = vld [vmem:[#allocation7 + $0x3c] ss:$24 sps:$4 sm:$0xff]   ;;  %v4395_v42 = vld [vmem:[#allocation7 + $0x30] ss:$24 sps:$4 sm:$0xff]   ;;  %s5130_s24 = sld [smem:[#allocation63_spill]] }
  0xd2   : > { %1377 = vmatprep.subr.bf16.mxu1 %v4357_v29  ;;  %5081 = vst [vmem:[#allocation34_spill] sm:$0xff] %v4389_v41  ;;  %v4397_v43 = vld [vmem:[#allocation7 + $0x38] ss:$24 sps:$4 sm:$0xff]   ;;  %v4399_v44 = vld [vmem:[#allocation7 + $0x4] ss:$24 sps:$4 sm:$0xff]   ;;  %s2790_s9 = scalar_lea.sflag [#allocation4], %s4251_s27 }
  0xd3   : > { %5082 = vst [vmem:[#allocation35_spill] sm:$0xff] %v4397_v43  ;;  %v4401_v45 = vld [vmem:[#allocation7 + $0xc] ss:$24 sps:$4 sm:$0xff]   ;;  %v4407_v46 = vld [vmem:[#allocation7] ss:$24 sps:$4 sm:$0xff]   ;;  %p5131_p11 = scmp.ne.s32.totalorder %s5059_s18, 0 }
  0xd4   : > { %1335 = vmatpush1.bf16.msra.mxu0 %v4359_v30  ;;  %5083 = vst [vmem:[#allocation36_spill] sm:$0xff] %v4401_v45  ;;  %v4409_v47 = vld [vmem:[#allocation7 + $0x8] ss:$24 sps:$4 sm:$0xff]   ;;  %v4411_v48 = vld [vmem:[#allocation7 + $0x2d4] ss:$24 sps:$4 sm:$0xff]   ;;  %s3944_s21 = smov [#allocation17]  }
  0xd5   : > { %1378 = vmatpush1.bf16.msra.mxu1 %v4363_v31  ;;  %1336 = vmatprep.subr.bf16.mxu0 %v4365_v32  ;;  %5084 = vst [vmem:[#allocation37_spill] sm:$0xff] %v4409_v47  ;;  %v4413_v49 = vld [vmem:[#allocation7 + $0x2dc] ss:$24 sps:$4 sm:$0xff]   ;;  %v4419_v50 = vld [vmem:[#allocation7 + $0x2d0] ss:$24 sps:$4 sm:$0xff]   ;;  %s3846_s14 = sshll.u32 %s3944_s21, 4  ;;  %s3847_s14 = int_to_ptr.vmem [resolvable:$false] %s3846_s14 }
  0xd6   : > { %1379 = vmatprep.subr.bf16.mxu1 %v4367_v33  ;;  %5085 = vst [vmem:[#allocation38_spill] sm:$0xff] %v4413_v49  ;;  %v4421_v51 = vld [vmem:[#allocation7 + $0x2d8] ss:$24 sps:$4 sm:$0xff]   ;;  %v4513_v11 = vld [vmem:[#allocation7 + $0x1e8] ss:$24 sps:$4 sm:$0xff]   ;;  %s3848_s19 = scalar_lea.vmem %s3847_s14, 64 }
  0xd7   : > { %5086 = vst [vmem:[#allocation39_spill] sm:$0xff] %v4421_v51  ;;  %5096 = vst [vmem:[#allocation49_spill] sm:$0xff] %v4513_v11  ;;  %v4519_v10 = vld [vmem:[#allocation7 + $0x1b4] ss:$24 sps:$4 sm:$0xff]   ;;  %v4571_v29 = vld [vmem:[#allocation7 + $0x160] ss:$24 sps:$4 sm:$0xff]   ;;  %s2801_s8 = scalar_lea.hbm %s5130_s24, %s3157_s22 }
  0xd8   : > { %1337 = vmatpush1.bf16.msra.mxu0 %v4371_v34 }
  0xd9   : > { %1380 = vmatpush1.bf16.msra.mxu1 %v4373_v35  ;;  %1338 = vmatprep.subr.bf16.mxu0 %v4375_v36 }
  0xda   : > { %1381 = vmatprep.subr.bf16.mxu1 %v4377_v37 }
  0xdc   : > { %1339 = vmatpush1.bf16.msra.mxu0 %v4383_v38 }
  0xdd   : > { %1382 = vmatpush1.bf16.msra.mxu1 %v4385_v39  ;;  %1340 = vmatprep.subr.bf16.mxu0 %v4387_v40 }
  0xde   : > { %1383 = vmatprep.subr.bf16.mxu1 %v4389_v41 }
  0xe0   : > { %1341 = vmatpush1.bf16.msra.mxu0 %v4395_v42 }
  0xe1   : > { %1384 = vmatpush1.bf16.msra.mxu1 %v4397_v43  ;;  %1342 = vmatprep.subr.bf16.mxu0 %v4399_v44 }
  0xe2   : > { %1385 = vmatprep.subr.bf16.mxu1 %v4401_v45 }
  0xe4   : > { %1343 = vmatpush1.bf16.msra.mxu0 %v4407_v46 }
  0xe5   : > { %1386 = vmatpush1.bf16.msra.mxu1 %v4409_v47  ;;  %1344 = vmatprep.subr.bf16.mxu0 %v4411_v48 }
  0xe6   : > { %1387 = vmatprep.subr.bf16.mxu1 %v4413_v49 }
  0xe8   : > { %1345 = vmatpush2.bf16.msra.mxu0 %v4419_v50 }
  0xe9   : > { %1388 = vmatpush2.bf16.msra.mxu1 %v4421_v51 }
 0x150   : > { %v635_v52 = vpop.xlane.xlu0 %634 }
 0x151   : > { %v640_v53 = vmul.f32 0.00390625, %v635_v52  ;;  %v4459_v52 = vld [vmem:[#allocation7 + $0x2a4] ss:$24 sps:$4 sm:$0xff]  }
 0x152   : > { %1346 = vmatprep.subr.bf16.mxu0 %v4459_v52 }
 0x153   : > { %v4430_v54 = vsub.f32 %v4289_v4, %v640_v53  ;;  %v4433_v55 = vsub.f32 %v4292_v5, %v640_v53  ;;  %v4461_v53 = vld [vmem:[#allocation7 + $0x2ac] ss:$24 sps:$4 sm:$0xff]  }
 0x154   : > { %v638_v56 = vpop.xlane.xlu0 %637  ;;  %5087 = vst [vmem:[#allocation40_spill] sm:$0xff] %v4461_v53  ;;  %1389 = vmatprep.subr.bf16.mxu1 %v4461_v53 }
 0x155   : > { %v641_v57 = vmul.f32 0.00390625, %v638_v56  ;;  %v646_v58 = vmul.f32 %v4430_v54, %v4430_v54  ;;  %v647_v59 = vmul.f32 %v4433_v55, %v4433_v55 }
 0x157   : > { %v4440_v60 = vsub.f32 %v4295_v6, %v641_v57  ;;  %v4443_v61 = vsub.f32 %v4300_v8, %v641_v57  ;;  %v650_v62 = vadd.f32 %v647_v59, %v646_v58  ;;  %v4463_v57 = vld [vmem:[#allocation7 + $0x2a0] ss:$24 sps:$4 sm:$0xff]   ;;  %v4471_v58 = vld [vmem:[#allocation7 + $0x274] ss:$24 sps:$4 sm:$0xff]  }
 0x158   : > { %v712_v63 = vpop.xlane.xlu0 %711  ;;  %1347 = vmatpush2.bf16.msra.mxu0 %v4463_v57  ;;  %v4473_v59 = vld [vmem:[#allocation7 + $0x27c] ss:$24 sps:$4 sm:$0xff]  }
 0x159   : > { %v713_v0 = vmul.f32 0.00390625, %v712_v63  ;;  %651 = vadd.xlane.f32.xlu1 %v650_v62  ;;  %v648_v1 = vmul.f32 %v4440_v60, %v4440_v60  ;;  %v649_v4 = vmul.f32 %v4443_v61, %v4443_v61  ;;  %5089 = vst [vmem:[#allocation42_spill] sm:$0xff] %v4473_v59  ;;  %v4475_v62 = vld [vmem:[#allocation7 + $0x270] ss:$24 sps:$4 sm:$0xff]   ;;  %1348 = vmatprep.subr.bf16.mxu0 %v4471_v58 }
 0x15a   : > { %v4477_v63 = vld [vmem:[#allocation7 + $0x278] ss:$24 sps:$4 sm:$0xff]  }
 0x15b   : > { %v718_v5 = vrot.slane %v713_v0, %v4284_v2  ;;  %v653_v7 = vadd.f32 %v649_v4, %v648_v1  ;;  %5090 = vst [vmem:[#allocation43_spill] sm:$0xff] %v4477_v63  ;;  %v4483_v0 = vld [vmem:[#allocation7 + $0x244] ss:$24 sps:$4 sm:$0xff]   ;;  %v4487_v4 = vld [vmem:[#allocation7 + $0x240] ss:$24 sps:$4 sm:$0xff]  }
 0x15c   : > { %1349 = vmatpush2.bf16.msra.mxu0 %v4475_v62  ;;  %v4485_v1 = vld [vmem:[#allocation7 + $0x24c] ss:$24 sps:$4 sm:$0xff]  }
 0x15d   : > { %v4451_v12 = vsub.f32 %v4305_v9, %v718_v5  ;;  %654 = vadd.xlane.f32.xlu1 %v653_v7  ;;  %v4465_v9 = vld [vmem:[#allocation7 + $0x2a8] ss:$24 sps:$4 sm:$0xff]   ;;  %5091 = vst [vmem:[#allocation44_spill] sm:$0xff] %v4485_v1  ;;  %1350 = vmatprep.subr.bf16.mxu0 %v4483_v0  ;;  %v4495_v7 = vld [vmem:[#allocation7 + $0x214] ss:$24 sps:$4 sm:$0xff]  }
 0x15e   : > { %5088 = vst [vmem:[#allocation41_spill] sm:$0xff] %v4465_v9  ;;  %1390 = vmatpush2.bf16.msra.mxu1 %v4465_v9  ;;  %v4489_v5 = vld [vmem:[#allocation7 + $0x248] ss:$24 sps:$4 sm:$0xff]  }
 0x15f   : > { %v721_v6 = vmul.f32 %v4451_v12, %v4451_v12  ;;  %1391 = vmatprep.subr.bf16.mxu1 %v4473_v59  ;;  %5092 = vst [vmem:[#allocation45_spill] sm:$0xff] %v4489_v5 }
 0x160   : > { %1351 = vmatpush2.bf16.msra.mxu0 %v4487_v4 }
 0x161   : > { %v726_v8 = vrot.slane %v721_v6, %v4284_v2  ;;  %v730_v13 = vrot.slane %v721_v6, %v4286_v3  ;;  %v4497_v6 = vld [vmem:[#allocation7 + $0x21c] ss:$24 sps:$4 sm:$0xff]   ;;  %1352 = vmatprep.subr.bf16.mxu0 %v4495_v7 }
 0x162   : > { %1392 = vmatpush2.bf16.msra.mxu1 %v4477_v63  ;;  %5093 = vst [vmem:[#allocation46_spill] sm:$0xff] %v4497_v6  ;;  %v4537_v63 = vld [vmem:[#allocation7 + $0x188] ss:$24 sps:$4 sm:$0xff]  }
 0x163   : > { %v733_v14 = vsel %vm707_vm0, %v726_v8, 0.0  ;;  %v734_v15 = vsel %vm707_vm0, %v730_v13, 0.0  ;;  %1393 = vmatprep.subr.bf16.mxu1 %v4485_v1  ;;  %v4499_v8 = vld [vmem:[#allocation7 + $0x210] ss:$24 sps:$4 sm:$0xff]   ;;  %v4533_v1 = vld [vmem:[#allocation7 + $0x18c] ss:$24 sps:$4 sm:$0xff]  }
 0x164   : > { %v735_v56 = vadd.f32 %v734_v15, %v733_v14  ;;  %v4501_v13 = vld [vmem:[#allocation7 + $0x218] ss:$24 sps:$4 sm:$0xff]   ;;  %1353 = vmatpush2.bf16.msra.mxu0 %v4499_v8  ;;  %v4507_v14 = vld [vmem:[#allocation7 + $0x1e4] ss:$24 sps:$4 sm:$0xff]   ;;  %5099 = vst [vmem:[#allocation52_spill] sm:$0xff] %v4533_v1  ;;  %5100 = vst [vmem:[#allocation53_spill] sm:$0xff] %v4537_v63 }
 0x165   : > { %5094 = vst [vmem:[#allocation47_spill] sm:$0xff] %v4501_v13  ;;  %v4509_v15 = vld [vmem:[#allocation7 + $0x1ec] ss:$24 sps:$4 sm:$0xff]   ;;  %1354 = vmatprep.subr.bf16.mxu0 %v4507_v14 }
 0x166   : > { %736 = vadd.xlane.f32.xlu1 %v735_v56  ;;  %1394 = vmatpush2.bf16.msra.mxu1 %v4489_v5  ;;  %5095 = vst [vmem:[#allocation48_spill] sm:$0xff] %v4509_v15  ;;  %v4511_v56 = vld [vmem:[#allocation7 + $0x1e0] ss:$24 sps:$4 sm:$0xff]  }
 0x167   : > { %1395 = vmatprep.subr.bf16.mxu1 %v4497_v6  ;;  %v4521_v6 = vld [vmem:[#allocation7 + $0x1bc] ss:$24 sps:$4 sm:$0xff]   ;;  %v4525_v5 = vld [vmem:[#allocation7 + $0x1b8] ss:$24 sps:$4 sm:$0xff]  }
 0x168   : > { %1355 = vmatpush2.bf16.msra.mxu0 %v4511_v56  ;;  %5097 = vst [vmem:[#allocation50_spill] sm:$0xff] %v4521_v6  ;;  %5098 = vst [vmem:[#allocation51_spill] sm:$0xff] %v4525_v5 }
 0x169   : > { %1356 = vmatprep.subr.bf16.mxu0 %v4519_v10 }
 0x16a   : > { %1396 = vmatpush2.bf16.msra.mxu1 %v4501_v13  ;;  %v4523_v13 = vld [vmem:[#allocation7 + $0x1b0] ss:$24 sps:$4 sm:$0xff]  }
 0x16b   : > { %1397 = vmatprep.subr.bf16.mxu1 %v4509_v15  ;;  %v4531_v15 = vld [vmem:[#allocation7 + $0x184] ss:$24 sps:$4 sm:$0xff]  }
 0x16c   : > { %1357 = vmatpush2.bf16.msra.mxu0 %v4523_v13 }
 0x16d   : > { %1358 = vmatprep.subr.bf16.mxu0 %v4531_v15 }
 0x16e   : > { %1398 = vmatpush2.bf16.msra.mxu1 %v4513_v11  ;;  %v4535_v11 = vld [vmem:[#allocation7 + $0x180] ss:$24 sps:$4 sm:$0xff]  }
 0x16f   : > { %1399 = vmatprep.subr.bf16.mxu1 %v4521_v6  ;;  %v4543_v6 = vld [vmem:[#allocation7 + $0x164] ss:$24 sps:$4 sm:$0xff]  }
 0x170   : > { %1359 = vmatpush2.bf16.msra.mxu0 %v4535_v11 }
 0x171   : > { %1414 = vmatprep.subr.bf16.mxu0 %v4543_v6 }
 0x172   : > { %1400 = vmatpush2.bf16.msra.mxu1 %v4525_v5 }
 0x173   : > { %1401 = vmatprep.subr.bf16.mxu1 %v4533_v1 }
 0x176   : > { %1402 = vmatpush2.bf16.msra.mxu1 %v4537_v63  ;;  %v631_v63 = vld [vmem:[%s4989_s3] sm:$0x3] }
 0x177   : > { %1470 = vmatprep.subr.bf16.mxu1 %v4321_v16  ;;  %v632_v16 = vld [vmem:[%s4990_s4] sm:$0x3] }
 0x1e2   : > { %v652_v5 = vpop.xlane.xlu1 %651 }
 0x1e3   : > { %v656_v59 = vmul.f32 0.00390625, %v652_v5 }
 0x1e5   : > { %v658_v9 = vadd.f32 1e-05, %v656_v59 }
 0x1e6   : > { %v655_v53 = vpop.xlane.xlu1 %654 }
 0x1e7   : > { %3568 = vrsqrt.f32 %v658_v9  ;;  %v657_v51 = vmul.f32 0.00390625, %v655_v53  ;;  %v674_v9 = vrot.slane %v631_v63, %v4286_v3  ;;  %v689_v53 = vrot.slane %v632_v16, %v4286_v3 }
 0x1e9   : > { %v659_v49 = vadd.f32 1e-05, %v657_v51 }
 0x1eb   : > { %3570 = vrsqrt.f32 %v659_v49  ;;  %v670_v49 = vrot.slane %v631_v63, %v4284_v2 }
 0x1ef   : > { %v737_v47 = vpop.xlane.xlu1 %736 }
 0x1f0   : > { %v738_v1 = vmul.f32 0.00390625, %v737_v47 }
 0x1f2   : > { %v739_v45 = vadd.f32 1e-05, %v738_v1  ;;  %v685_v1 = vrot.slane %v632_v16, %v4284_v2 }
 0x1f4   : > { %v3569_v43 = vpop.eup %3568  ;;  %3572 = vrsqrt.f32 %v739_v45 }
 0x1f5   : > { %v663_v59 = vmul.f32 %v3569_v43, %v4433_v55  ;;  %v662_v51 = vmul.f32 %v3569_v43, %v4430_v54 }
 0x1f7   : > { %v678_v45 = vmul.f32 %v674_v9, %v663_v59  ;;  %v677_v39 = vmul.f32 %v670_v49, %v662_v51  ;;  %v4593_v51 = vld [vmem:[#allocation7 + $0x100] ss:$24 sps:$4 sm:$0xff]  }
 0x1f8   : > { %v3571_v47 = vpop.eup %3570 }
 0x1f9   : > { %v665_v5 = vmul.f32 %v3571_v47, %v4443_v61  ;;  %v664_v41 = vmul.f32 %v3571_v47, %v4440_v60  ;;  %v4561_v55 = vadd.f32 %v689_v53, %v678_v45  ;;  %v4565_v43 = vadd.f32 %v685_v1, %v677_v39  ;;  %v4577_v60 = vld [vmem:[#allocation7 + $0x134] ss:$24 sps:$4 sm:$0xff]   ;;  %v4587_v39 = vld [vmem:[#allocation7 + $0x104] ss:$24 sps:$4 sm:$0xff]  }
 0x1fa   : > { %v5114_v47 = vld [vmem:[#allocation41_spill] sm:$0xff] }
 0x1fb   : > { %v680_v37 = vmul.f32 %v674_v9, %v665_v5  ;;  %v679_v35 = vmul.f32 %v670_v49, %v664_v41  ;;  %v5113_v49 = vld [vmem:[#allocation40_spill] sm:$0xff]  ;;  %v5118_v45 = vld [vmem:[#allocation45_spill] sm:$0xff] }
 0x1fc   : > { %v5117_v5 = vld [vmem:[#allocation44_spill] sm:$0xff] }
 0x1fd   : > { %v4563_v33 = vadd.f32 %v689_v53, %v680_v37  ;;  %v4567_v54 = vadd.f32 %v685_v1, %v679_v35  ;;  %v4584_v35 = vld [vmem:[#allocation7 + $0x130] ss:$24 sps:$4 sm:$0xff]  }
 0x1fe   : > { %v5115_v53 = vld [vmem:[#allocation42_spill] sm:$0xff]  ;;  %v5116_v1 = vld [vmem:[#allocation43_spill] sm:$0xff] }
 0x1ff   : > { %v751_v31 = vpack.c.bf16 %v4563_v33, %v4561_v55  ;;  %v4575_v61 = vpack.c.bf16 %v4567_v54, %v4565_v43 }
 0x201   : > { %v3573_v41 = vpop.eup %3572  ;;  %1360 = vmatprep.mubr.bf16.mxu0 %v751_v31  ;;  %1403 = vmatprep.mubr.bf16.mxu1 %v751_v31 }
 0x202   : > { %v745_v37 = vrot.slane %v3573_v41, %v4284_v2  ;;  %1361 = vmatmul.mubr.bf16.vlgmr.msra.gmra.mxu0 %v4575_v61  ;;  %1404 = vmatmul.mubr.bf16.vlgmr.msra.gmra.mxu1 %v4575_v61  ;;  %v5121_v41 = vld [vmem:[#allocation48_spill] sm:$0xff] }
 0x203   : > { %1415 = vmatpush1.bf16.msra.mxu0 %v4571_v29  ;;  %1471 = vmatpush1.bf16.msra.mxu1 %v4325_v18  ;;  %v4597_v18 = vld [vmem:[#allocation7 + $0xd4] ss:$24 sps:$4 sm:$0xff]  }
 0x204   : > { %1446 = vmatprep.mubr.bf16.mxu0 %v751_v31  ;;  %1416 = vmatprep.subr.bf16.mxu0 %v4577_v60  ;;  %v747_v59 = vmul.f32 %v745_v37, %v4451_v12  ;;  %v5122_v37 = vld [vmem:[#allocation49_spill] sm:$0xff] }
 0x205   : > { %1472 = vmatprep.subr.bf16.mxu1 %v4329_v20  ;;  %v4607_v20 = vld [vmem:[#allocation7 + $0xd0] ss:$24 sps:$4 sm:$0xff]  }
 0x206   : > { %v748_v9 = vmul.f32 %v747_v59, %v631_v63  ;;  %v4620_v63 = vld [vmem:[#allocation7 + $0xa0] ss:$24 sps:$4 sm:$0xff]  }
 0x207   : > { %1417 = vmatpush1.bf16.msra.mxu0 %v4584_v35  ;;  %1473 = vmatpush1.bf16.msra.mxu1 %v4337_v22  ;;  %v5125_v59 = vld [vmem:[#allocation52_spill] sm:$0xff] }
 0x208   : > { %1418 = vmatprep.subr.bf16.mxu0 %v4587_v39  ;;  %1474 = vmatprep.subr.bf16.mxu1 %v4343_v24  ;;  %v4599_v31 = vadd.f32 %v748_v9, %v632_v16  ;;  %v4615_v24 = vld [vmem:[#allocation7 + $0xa4] ss:$24 sps:$4 sm:$0xff]  }
 0x209   : > { %v4632_v16 = vld [vmem:[#allocation7 + $0x44] ss:$24 sps:$4 sm:$0xff]  }
 0x20a   : > { %v4603_v12 = vrot.slane %v4599_v31, %v4286_v3  ;;  %v5126_v9 = vld [vmem:[#allocation53_spill] sm:$0xff] }
 0x20b   : > { %1419 = vmatpush1.bf16.msra.mxu0 %v4593_v51  ;;  %1475 = vmatpush1.bf16.msra.mxu1 %v4349_v26  ;;  %v4624_v26 = vld [vmem:[#allocation7 + $0x74] ss:$24 sps:$4 sm:$0xff]  }
 0x20c   : > { %1420 = vmatprep.subr.bf16.mxu0 %v4597_v18  ;;  %1476 = vmatprep.subr.bf16.mxu1 %v4355_v28  ;;  %v4613_v22 = vpack.c.bf16 %v4603_v12, %v4603_v12  ;;  %v4628_v28 = vld [vmem:[#allocation7 + $0x70] ss:$24 sps:$4 sm:$0xff]  }
 0x20e   : > { %1502 = vmatprep.mubr.bf16.mxu1 %v4613_v22 }
 0x20f   : > { %1421 = vmatpush1.bf16.msra.mxu0 %v4607_v20  ;;  %1477 = vmatpush1.bf16.msra.mxu1 %v4359_v30  ;;  %v4636_v30 = vld [vmem:[#allocation7 + $0x40] ss:$24 sps:$4 sm:$0xff]  }
 0x210   : > { %1422 = vmatprep.subr.bf16.mxu0 %v4615_v24  ;;  %1478 = vmatprep.subr.bf16.mxu1 %v4365_v32  ;;  %v4640_v32 = vld [vmem:[#allocation7 + $0x14] ss:$24 sps:$4 sm:$0xff]  }
 0x213   : > { %1423 = vmatpush1.bf16.msra.mxu0 %v4620_v63  ;;  %1479 = vmatpush1.bf16.msra.mxu1 %v4371_v34  ;;  %v4644_v34 = vld [vmem:[#allocation7 + $0x10] ss:$24 sps:$4 sm:$0xff]  }
 0x214   : > { %1424 = vmatprep.subr.bf16.mxu0 %v4624_v26  ;;  %1480 = vmatprep.subr.bf16.mxu1 %v4375_v36  ;;  %v4648_v36 = vld [vmem:[#allocation7 + $0x2e4] ss:$24 sps:$4 sm:$0xff]  }
 0x217   : > { %1425 = vmatpush1.bf16.msra.mxu0 %v4628_v28  ;;  %1481 = vmatpush1.bf16.msra.mxu1 %v4383_v38  ;;  %v4652_v38 = vld [vmem:[#allocation7 + $0x2e0] ss:$24 sps:$4 sm:$0xff]  }
 0x218   : > { %1426 = vmatprep.subr.bf16.mxu0 %v4632_v16  ;;  %1482 = vmatprep.subr.bf16.mxu1 %v4387_v40  ;;  %v4656_v40 = vld [vmem:[#allocation7 + $0x2b4] ss:$24 sps:$4 sm:$0xff]  }
 0x21b   : > { %1427 = vmatpush1.bf16.msra.mxu0 %v4636_v30  ;;  %1483 = vmatpush1.bf16.msra.mxu1 %v4395_v42  ;;  %v4660_v42 = vld [vmem:[#allocation7 + $0x2b0] ss:$24 sps:$4 sm:$0xff]  }
 0x21c   : > { %1428 = vmatprep.subr.bf16.mxu0 %v4640_v32  ;;  %1484 = vmatprep.subr.bf16.mxu1 %v4399_v44  ;;  %v4664_v44 = vld [vmem:[#allocation7 + $0x284] ss:$24 sps:$4 sm:$0xff]  }
 0x21f   : > { %1429 = vmatpush1.bf16.msra.mxu0 %v4644_v34  ;;  %1485 = vmatpush1.bf16.msra.mxu1 %v4407_v46  ;;  %v4668_v46 = vld [vmem:[#allocation7 + $0x280] ss:$24 sps:$4 sm:$0xff]  }
 0x220   : > { %1430 = vmatprep.subr.bf16.mxu0 %v4648_v36  ;;  %1486 = vmatprep.subr.bf16.mxu1 %v4411_v48  ;;  %v4672_v48 = vld [vmem:[#allocation7 + $0x254] ss:$24 sps:$4 sm:$0xff]  }
 0x223   : > { %1431 = vmatpush2.bf16.msra.mxu0 %v4652_v38  ;;  %1487 = vmatpush2.bf16.msra.mxu1 %v4419_v50  ;;  %v4676_v50 = vld [vmem:[#allocation7 + $0x250] ss:$24 sps:$4 sm:$0xff]  }
 0x224   : > { %1432 = vmatprep.subr.bf16.mxu0 %v4656_v40  ;;  %1488 = vmatprep.subr.bf16.mxu1 %v4459_v52  ;;  %v4680_v52 = vld [vmem:[#allocation7 + $0x224] ss:$24 sps:$4 sm:$0xff]  }
 0x227   : > { %1433 = vmatpush2.bf16.msra.mxu0 %v4660_v42  ;;  %1489 = vmatpush2.bf16.msra.mxu1 %v4463_v57  ;;  %v4684_v57 = vld [vmem:[#allocation7 + $0x220] ss:$24 sps:$4 sm:$0xff]  }
 0x228   : > { %1434 = vmatprep.subr.bf16.mxu0 %v4664_v44  ;;  %1490 = vmatprep.subr.bf16.mxu1 %v4471_v58  ;;  %v4688_v58 = vld [vmem:[#allocation7 + $0x1f4] ss:$24 sps:$4 sm:$0xff]  }
 0x22b   : > { %1435 = vmatpush2.bf16.msra.mxu0 %v4668_v46  ;;  %1491 = vmatpush2.bf16.msra.mxu1 %v4475_v62  ;;  %v4692_v62 = vld [vmem:[#allocation7 + $0x1f0] ss:$24 sps:$4 sm:$0xff]  }
 0x22c   : > { %1436 = vmatprep.subr.bf16.mxu0 %v4672_v48  ;;  %1492 = vmatprep.subr.bf16.mxu1 %v4483_v0  ;;  %v4696_v0 = vld [vmem:[#allocation7 + $0x1c4] ss:$24 sps:$4 sm:$0xff]  }
 0x22f   : > { %1437 = vmatpush2.bf16.msra.mxu0 %v4676_v50  ;;  %1493 = vmatpush2.bf16.msra.mxu1 %v4487_v4  ;;  %v4700_v4 = vld [vmem:[#allocation7 + $0x1c0] ss:$24 sps:$4 sm:$0xff]  }
 0x230   : > { %1438 = vmatprep.subr.bf16.mxu0 %v4680_v52  ;;  %1494 = vmatprep.subr.bf16.mxu1 %v4495_v7  ;;  %v4704_v7 = vld [vmem:[#allocation7 + $0x194] ss:$24 sps:$4 sm:$0xff]  }
 0x233   : > { %1439 = vmatpush2.bf16.msra.mxu0 %v4684_v57  ;;  %1495 = vmatpush2.bf16.msra.mxu1 %v4499_v8  ;;  %v4708_v8 = vld [vmem:[#allocation7 + $0x190] ss:$24 sps:$4 sm:$0xff]  }
 0x234   : > { %1440 = vmatprep.subr.bf16.mxu0 %v4688_v58  ;;  %1496 = vmatprep.subr.bf16.mxu1 %v4507_v14  ;;  %v4714_v14 = vrot.slane %v4599_v31, %v4284_v2 }
 0x237   : > { %1441 = vmatpush2.bf16.msra.mxu0 %v4692_v62  ;;  %1497 = vmatpush2.bf16.msra.mxu1 %v4511_v56  ;;  %v5112_v56 = vld [vmem:[#allocation39_spill] sm:$0xff] }
 0x238   : > { %1442 = vmatprep.subr.bf16.mxu0 %v4696_v0  ;;  %1498 = vmatprep.subr.bf16.mxu1 %v4519_v10  ;;  %v4720_v10 = vpack.c.bf16 %v4714_v14, %v4714_v14 }
 0x23b   : > { %1443 = vmatpush2.bf16.msra.mxu0 %v4700_v4  ;;  %1499 = vmatpush2.bf16.msra.mxu1 %v4523_v13  ;;  %v5110_v13 = vld [vmem:[#allocation37_spill] sm:$0xff] }
 0x23c   : > { %1444 = vmatprep.subr.bf16.mxu0 %v4704_v7  ;;  %1500 = vmatprep.subr.bf16.mxu1 %v4531_v15  ;;  %v5111_v15 = vld [vmem:[#allocation38_spill] sm:$0xff] }
 0x23f   : > { %1445 = vmatpush2.bf16.msra.mxu0 %v4708_v8  ;;  %1501 = vmatpush2.bf16.msra.mxu1 %v4535_v11  ;;  %v5101_v11 = vld [vmem:[#allocation28_spill] sm:$0xff] }
 0x240   : > { %1511 = vmatprep.subr.bf16.mxu0 %v4323_v17  ;;  %1552 = vmatprep.subr.bf16.mxu1 %v4543_v6  ;;  %v5102_v17 = vld [vmem:[#allocation29_spill] sm:$0xff]  ;;  %v5109_v6 = vld [vmem:[#allocation36_spill] sm:$0xff] }
 0x242   : > { %1447 = vmatmul.mubr.bf16.vlgmr.msra.gmra.mxu0 %v4575_v61  ;;  %1503 = vmatmul.mubr.bf16.vlgmr.msra.gmra.mxu1 %v4720_v10  ;;  %v5119_v61 = vld [vmem:[#allocation46_spill] sm:$0xff] }
 0x243   : > { %1512 = vmatpush1.bf16.msra.mxu0 %v4327_v19  ;;  %1543 = vmatprep.mubr.bf16.mxu0 %v4613_v22  ;;  %v5103_v19 = vld [vmem:[#allocation30_spill] sm:$0xff] }
 0x244   : > { %1553 = vmatpush1.bf16.msra.mxu1 %v4571_v29  ;;  %1584 = vmatprep.mubr.bf16.mxu1 %v4613_v22  ;;  %v5108_v29 = vld [vmem:[#allocation35_spill] sm:$0xff] }
 0x245   : > { %1513 = vmatprep.subr.bf16.mxu0 %v4331_v21  ;;  %1554 = vmatprep.subr.bf16.mxu1 %v4577_v60  ;;  %v5104_v21 = vld [vmem:[#allocation31_spill] sm:$0xff] }
 0x246   : > { %v5120_v60 = vld [vmem:[#allocation47_spill] sm:$0xff] }
 0x247   : > { %1514 = vmatpush1.bf16.msra.mxu0 %v4339_v23  ;;  %v5105_v23 = vld [vmem:[#allocation32_spill] sm:$0xff] }
 0x248   : > { %1555 = vmatpush1.bf16.msra.mxu1 %v4584_v35  ;;  %1515 = vmatprep.subr.bf16.mxu0 %v4345_v25  ;;  %v5106_v25 = vld [vmem:[#allocation33_spill] sm:$0xff]  ;;  %v5123_v35 = vld [vmem:[#allocation50_spill] sm:$0xff] }
 0x249   : > { %1556 = vmatprep.subr.bf16.mxu1 %v4587_v39  ;;  %v5124_v39 = vld [vmem:[#allocation51_spill] sm:$0xff] }
 0x24b   : > { %1516 = vmatpush1.bf16.msra.mxu0 %v4351_v27  ;;  %v5107_v27 = vld [vmem:[#allocation34_spill] sm:$0xff] }
 0x24c   : > { %1557 = vmatpush1.bf16.msra.mxu1 %v4593_v51  ;;  %1517 = vmatprep.subr.bf16.mxu0 %v5101_v11 }
 0x24d   : > { %1558 = vmatprep.subr.bf16.mxu1 %v4597_v18 }
 0x24f   : > { %1518 = vmatpush1.bf16.msra.mxu0 %v5102_v17 }
 0x250   : > { %1559 = vmatpush1.bf16.msra.mxu1 %v4607_v20  ;;  %1519 = vmatprep.subr.bf16.mxu0 %v5103_v19 }
 0x251   : > { %1560 = vmatprep.subr.bf16.mxu1 %v4615_v24 }
 0x253   : > { %1520 = vmatpush1.bf16.msra.mxu0 %v5104_v21 }
 0x254   : > { %1561 = vmatpush1.bf16.msra.mxu1 %v4620_v63  ;;  %1521 = vmatprep.subr.bf16.mxu0 %v5105_v23 }
 0x255   : > { %1562 = vmatprep.subr.bf16.mxu1 %v4624_v26 }
 0x257   : > { %1522 = vmatpush1.bf16.msra.mxu0 %v5106_v25 }
 0x258   : > { %1563 = vmatpush1.bf16.msra.mxu1 %v4628_v28  ;;  %1523 = vmatprep.subr.bf16.mxu0 %v5107_v27 }
 0x259   : > { %1564 = vmatprep.subr.bf16.mxu1 %v4632_v16 }
 0x25b   : > { %1524 = vmatpush1.bf16.msra.mxu0 %v5108_v29 }
 0x25c   : > { %1565 = vmatpush1.bf16.msra.mxu1 %v4636_v30  ;;  %1525 = vmatprep.subr.bf16.mxu0 %v5109_v6 }
 0x25d   : > { %1566 = vmatprep.subr.bf16.mxu1 %v4640_v32 }
 0x25f   : > { %1526 = vmatpush1.bf16.msra.mxu0 %v5110_v13 }
 0x260   : > { %1567 = vmatpush1.bf16.msra.mxu1 %v4644_v34  ;;  %1527 = vmatprep.subr.bf16.mxu0 %v5111_v15 }
 0x261   : > { %1568 = vmatprep.subr.bf16.mxu1 %v4648_v36 }
 0x263   : > { %1528 = vmatpush2.bf16.msra.mxu0 %v5112_v56 }
 0x264   : > { %1569 = vmatpush2.bf16.msra.mxu1 %v4652_v38  ;;  %1529 = vmatprep.subr.bf16.mxu0 %v5113_v49 }
 0x265   : > { %1570 = vmatprep.subr.bf16.mxu1 %v4656_v40 }
 0x267   : > { %1530 = vmatpush2.bf16.msra.mxu0 %v5114_v47 }
 0x268   : > { %1571 = vmatpush2.bf16.msra.mxu1 %v4660_v42  ;;  %1531 = vmatprep.subr.bf16.mxu0 %v5115_v53 }
 0x269   : > { %1572 = vmatprep.subr.bf16.mxu1 %v4664_v44 }
 0x26b   : > { %1532 = vmatpush2.bf16.msra.mxu0 %v5116_v1 }
 0x26c   : > { %1573 = vmatpush2.bf16.msra.mxu1 %v4668_v46  ;;  %1533 = vmatprep.subr.bf16.mxu0 %v5117_v5 }
 0x26d   : > { %1574 = vmatprep.subr.bf16.mxu1 %v4672_v48 }
 0x26f   : > { %1534 = vmatpush2.bf16.msra.mxu0 %v5118_v45 }
 0x270   : > { %1575 = vmatpush2.bf16.msra.mxu1 %v4676_v50  ;;  %1535 = vmatprep.subr.bf16.mxu0 %v5119_v61 }
 0x271   : > { %1576 = vmatprep.subr.bf16.mxu1 %v4680_v52 }
 0x273   : > { %1536 = vmatpush2.bf16.msra.mxu0 %v5120_v60 }
 0x274   : > { %1577 = vmatpush2.bf16.msra.mxu1 %v4684_v57  ;;  %1537 = vmatprep.subr.bf16.mxu0 %v5121_v41 }
 0x275   : > { %1578 = vmatprep.subr.bf16.mxu1 %v4688_v58 }
 0x277   : > { %1538 = vmatpush2.bf16.msra.mxu0 %v5122_v37 }
 0x278   : > { %1579 = vmatpush2.bf16.msra.mxu1 %v4692_v62  ;;  %1539 = vmatprep.subr.bf16.mxu0 %v5123_v35 }
 0x279   : > { %1580 = vmatprep.subr.bf16.mxu1 %v4696_v0 }
 0x27b   : > { %1540 = vmatpush2.bf16.msra.mxu0 %v5124_v39 }
 0x27c   : > { %1581 = vmatpush2.bf16.msra.mxu1 %v4700_v4  ;;  %1541 = vmatprep.subr.bf16.mxu0 %v5125_v59 }
 0x27d   : > { %1582 = vmatprep.subr.bf16.mxu1 %v4704_v7 }
 0x27f   : > { %1542 = vmatpush2.bf16.msra.mxu0 %v5126_v9 }
 0x280   : > { %1583 = vmatpush2.bf16.msra.mxu1 %v4708_v8 }
 0x282   : > { %1544 = vmatmul.mubr.bf16.vlgmr.msra.gmra.mxu0 %v4720_v10 }
 0x283   : > { %1585 = vmatmul.mubr.bf16.vlgmr.msra.gmra.mxu1 %v4720_v10 }
 0x2c2   : > { %v1362_v51 = vpop.f32.mrf.mxu0  ;;  %v1405_v18 = vpop.f32.mrf.mxu1 }
 0x2c3   : > { %v1597_v63 = vpack.c.bf16 %v1405_v18, %v1405_v18  ;;  %v1593_v34 = vpack.c.bf16 %v1362_v51, %v1362_v51 }
 0x2c4   : > { %v1364_v31 = vpop.f32.mrf.mxu0  ;;  %v1407_v20 = vpop.f32.mrf.mxu1 }
 0x2c5   : > { %v1594_v22 = vpack.c.bf16 %v1364_v31, %v1364_v31  ;;  %v1598_v24 = vpack.c.bf16 %v1407_v20, %v1407_v20 }
 0x2c6   : > { %v1409_v26 = vpop.f32.mrf.mxu1  ;;  %v1366_v28 = vpop.f32.mrf.mxu0 }
 0x2c7   : > { %1615 = vmatprep.subr.bf16.mxu1 %v1598_v24  ;;  %1633 = vmatprep.mubr.bf16.mxu1 %v1594_v22  ;;  %v1599_v36 = vpack.c.bf16 %v1409_v26, %v1409_v26  ;;  %v1595_v40 = vpack.c.bf16 %v1366_v28, %v1366_v28 }
 0x2c8   : > { %v1411_v16 = vpop.f32.mrf.mxu1  ;;  %1616 = vmatpush1.bf16.xpose.msra.mxu1 %v1597_v63  ;;  %v1368_v32 = vpop.f32.mrf.mxu0 }
 0x2c9   : > { %v1600_v30 = vpack.c.bf16 %v1411_v16, %v1411_v16  ;;  %v1596_v38 = vpack.c.bf16 %v1368_v32, %v1368_v32 }
 0x2cb   : > { %1655 = vmatprep.subr.bf16.mxu1 %v1600_v30 }
 0x2cf   : > { %1634 = vmatmul.mubr.bf16.vlgmr.msra.gmra.mxu1 %v1593_v34 }
 0x2d0   : > { %1656 = vmatpush1.bf16.xpose.msra.mxu1 %v1599_v36  ;;  %1673 = vmatprep.mubr.bf16.mxu1 %v1596_v38  ;;  %v3943_v36 = vmov 0  }
 0x2d7   : > { %1674 = vmatmul.mubr.bf16.vlgmr.msra.gmra.mxu1 %v1595_v40 }
 0x2d8   : > { %1822 = vmatprep.mubr.bf16.mxu1 %v3943_v36 }
 0x302   : > { %v4792_v42 = vpop.f32.mrf.mxu0  ;;  %v1504_v44 = vpop.f32.mrf.mxu1 }
 0x303   : > { %v1764_v46 = vpack.c.bf16 %v4792_v42, %v4792_v42  ;;  %v1706_v48 = vrot.slane %v1504_v44, %v4284_v2 }
 0x304   : > { %v4797_v50 = vpop.f32.mrf.mxu0  ;;  %v1506_v52 = vpop.f32.mrf.mxu1 }
 0x305   : > { %v1765_v57 = vpack.c.bf16 %v4797_v50, %v4797_v50  ;;  %v1710_v58 = vrot.slane %v1506_v52, %v4284_v2  ;;  %v1713_v62 = vmul.f32 %v1706_v48, %v1409_v26  ;;  %v1785_v7 = vsel %vm1783_vm1, %v1764_v46, 0 }
 0x306   : > { %v4802_v0 = vpop.f32.mrf.mxu0  ;;  %v1508_v4 = vpop.f32.mrf.mxu1  ;;  %v1711_v10 = vmul.f32 %v1706_v48, %v1405_v18 }
 0x307   : > { %3087 = vmatprep.subr.msk.bf16.mxu1 %vm1783_vm1, %v1765_v57  ;;  %v1714_v8 = vmul.f32 %v1710_v58, %v1411_v16  ;;  %v1712_v11 = vmul.f32 %v1710_v58, %v1407_v20 }
 0x308   : > { %v4806_v17 = vpop.f32.mrf.mxu0  ;;  %v1509_v19 = vpop.f32.mrf.mxu1  ;;  %1805 = vmatpush1.bf16.msra.mxu1 %v1785_v7 }
 0x309   : > { %v1767_v21 = vpack.c.bf16 %v4806_v17, %v4806_v17  ;;  %v1718_v23 = vadd.f32 %v1714_v8, %v1713_v62  ;;  %v1715_v25 = vadd.f32 %v1712_v11, %v1711_v10  ;;  %v1766_v19 = vpack.c.bf16 %v4802_v0, %v4802_v0 }
 0x30b   : > { %3089 = vmatprep.subr.msk.bf16.mxu1 %vm1783_vm1, %v1767_v21 }
 0x342   : > { %v1545_v27 = vpop.f32.mrf.mxu0 }
 0x343   : > { %v1686_v29 = vrot.slane %v1545_v27, %v4284_v2  ;;  %v1723_v6 = vmul.f32 %v1545_v27, %v1504_v44  ;;  %v4812_v13 = vpop.f32.mrf.mxu1  ;;  %v1835_v27 = vsel %vm1783_vm1, %v1766_v19, 0  ;;  %v3522_v19 = vld [vmem:[#allocation8 + $0x4] ss:$8 sps:$4 sm:$0xff]  }
 0x344   : > { %v1547_v15 = vpop.f32.mrf.mxu0 }
 0x345   : > { %v1690_v56 = vrot.slane %v1547_v15, %v4284_v2  ;;  %v1724_v49 = vmul.f32 %v1547_v15, %v1506_v52  ;;  %v4815_v47 = vpop.f32.mrf.mxu1  ;;  %v1691_v5 = vmul.f32 %v1686_v29, %v1362_v51  ;;  %v1725_v61 = vsel %vm707_vm0, %v1723_v6, 0.0 }
 0x346   : > { %v1549_v53 = vpop.f32.mrf.mxu0  ;;  %v1693_v9 = vmul.f32 %v1686_v29, %v1366_v28 }
 0x347   : > { %v1590_v1 = vpop.f32.mrf.mxu1  ;;  %v1692_v45 = vmul.f32 %v1690_v56, %v1364_v31  ;;  %v1726_v60 = vsel %vm707_vm0, %v1724_v49, 0.0  ;;  %v1694_v59 = vmul.f32 %v1690_v56, %v1368_v32  ;;  %v3472_v56 = vld [vmem:[#allocation11 + $0x70] ss:$8 sps:$4 sm:$0xff]   ;;  %v3474_v49 = vld [vmem:[#allocation11 + $0x74] ss:$8 sps:$4 sm:$0xff]  }
 0x348   : > { %v1550_v41 = vpop.f32.mrf.mxu0  ;;  %v1727_v37 = vadd.f32 %v1726_v60, %v1725_v61  ;;  %v3477_v53 = vld [vmem:[#allocation11 + $0x64] ss:$8 sps:$4 sm:$0xff]   ;;  %v3483_v60 = vld [vmem:[#allocation11 + $0x54] ss:$8 sps:$4 sm:$0xff]  }
 0x349   : > { %v1591_v35 = vpop.f32.mrf.mxu1  ;;  %v1695_v39 = vadd.f32 %v1692_v45, %v1691_v5  ;;  %v1698_v18 = vadd.f32 %v1694_v59, %v1693_v9  ;;  %v3478_v1 = vld [vmem:[#allocation8 + $0x70] ss:$8 sps:$4 sm:$0xff]   ;;  %v3480_v5 = vld [vmem:[#allocation8 + $0x74] ss:$8 sps:$4 sm:$0xff]   ;;  %v3475_v45 = vld [vmem:[#allocation11 + $0x60] ss:$8 sps:$4 sm:$0xff]  }
 0x34a   : > { %2269 = vmatprep.subr.bf16.mxu0 %v3480_v5  ;;  %v3486_v61 = vld [vmem:[#allocation8 + $0x64] ss:$8 sps:$4 sm:$0xff]   ;;  %v3484_v41 = vld [vmem:[#allocation8 + $0x60] ss:$8 sps:$4 sm:$0xff]   ;;  %v3481_v35 = vld [vmem:[#allocation11 + $0x50] ss:$8 sps:$4 sm:$0xff]  }
 0x34b   : > { %1696 = vadd.xlane.f32.xlu0 %v1695_v39  ;;  %2270 = vmatpush1.bf16.msra.mxu0 %v3478_v1  ;;  %v3489_v39 = vld [vmem:[#allocation11 + $0x44] ss:$8 sps:$4 sm:$0xff]  }
 0x34c   : > { %2271 = vmatprep.subr.bf16.mxu0 %v3486_v61  ;;  %v3490_v59 = vld [vmem:[#allocation8 + $0x50] ss:$8 sps:$4 sm:$0xff]   ;;  %v3498_v9 = vld [vmem:[#allocation8 + $0x44] ss:$8 sps:$4 sm:$0xff]  }
 0x34d   : > { %v3526_v1 = vld [vmem:[#allocation8 + $0xf0] ss:$8 sps:$4 sm:$0xff]  }
 0x34e   : > { %v3529_v61 = vld [vmem:[#allocation11 + $0xd0] ss:$8 sps:$4 sm:$0xff]  }
 0x34f   : > { %1699 = vadd.xlane.f32.xlu0 %v1698_v18  ;;  %2272 = vmatpush1.bf16.msra.mxu0 %v3484_v41  ;;  %v3487_v18 = vld [vmem:[#allocation11 + $0x40] ss:$8 sps:$4 sm:$0xff]  }
 0x353   : > { %1719 = vadd.xlane.f32.xlu0 %v1718_v23 }
 0x357   : > { %1728 = vadd.xlane.f32.xlu0 %v1727_v37  ;;  %v3492_v37 = vld [vmem:[#allocation8 + $0x54] ss:$8 sps:$4 sm:$0xff]  }
 0x358   : > { %2273 = vmatprep.subr.bf16.mxu0 %v3492_v37 }
 0x359   : > { %2274 = vmatpush1.bf16.msra.mxu0 %v3490_v59 }
 0x35a   : > { %2275 = vmatprep.subr.bf16.mxu0 %v3498_v9  ;;  %v3537_v9 = vld [vmem:[#allocation11 + $0xc4] ss:$8 sps:$4 sm:$0xff]  }
 0x38f   : > { %v1635_v20 = vpop.f32.mrf.mxu1 }
 0x390   : > { %v1681_v22 = vmul.f32 0.0625, %v1635_v20  ;;  %v3495_v20 = vld [vmem:[#allocation11 + $0x34] ss:$8 sps:$4 sm:$0xff]  }
 0x391   : > { %v1637_v51 = vpop.f32.mrf.mxu1 }
 0x392   : > { %v1732_v31 = vsel %vm1731_vm2, %v1681_v22, -inf  ;;  %v3504_v51 = vld [vmem:[#allocation8 + $0x34] ss:$8 sps:$4 sm:$0xff]  }
 0x393   : > { %1733 = vmax.xlane.f32.xlu1 %v1732_v31  ;;  %v1638_v24 = vpop.f32.mrf.mxu1  ;;  %v3493_v31 = vld [vmem:[#allocation11 + $0x30] ss:$8 sps:$4 sm:$0xff]  }
 0x394   : > { %v3501_v24 = vld [vmem:[#allocation11 + $0x24] ss:$8 sps:$4 sm:$0xff]  }
 0x395   : > { %v1639_v63 = vpop.f32.mrf.mxu1 }
 0x396   : > { %v3502_v63 = vld [vmem:[#allocation8 + $0x30] ss:$8 sps:$4 sm:$0xff]  }
 0x397   : > { %v1675_v26 = vpop.f32.mrf.mxu1 }
 0x398   : > { %v1682_v16 = vmul.f32 0.0625, %v1675_v26  ;;  %v3510_v26 = vld [vmem:[#allocation8 + $0x24] ss:$8 sps:$4 sm:$0xff]  }
 0x399   : > { %v1677_v30 = vpop.f32.mrf.mxu1 }
 0x39a   : > { %v1735_v32 = vsel %vm1731_vm2, %v1682_v16, -inf  ;;  %v3507_v30 = vld [vmem:[#allocation11 + $0x14] ss:$8 sps:$4 sm:$0xff]  }
 0x39b   : > { %1736 = vmax.xlane.f32.xlu1 %v1735_v32  ;;  %v1678_v28 = vpop.f32.mrf.mxu1  ;;  %v3508_v32 = vld [vmem:[#allocation8 + $0x20] ss:$8 sps:$4 sm:$0xff]  }
 0x39c   : > { %v3505_v28 = vld [vmem:[#allocation11 + $0x10] ss:$8 sps:$4 sm:$0xff]  }
 0x39d   : > { %v1679_v34 = vpop.f32.mrf.mxu1 }
 0x39e   : > { %v3513_v34 = vld [vmem:[#allocation11 + $0x4] ss:$8 sps:$4 sm:$0xff]  }
 0x39f   : > { %1716 = vadd.xlane.f32.xlu1 %v1715_v25 }
 0x3d4   : > { %v1697_v38 = vpop.xlane.xlu0 %1696 }
 0x3d5   : > { %v4821_v40 = vmul.f32 0.0625, %v1697_v38  ;;  %v3516_v38 = vld [vmem:[#allocation8 + $0x14] ss:$8 sps:$4 sm:$0xff]  }
 0x3d8   : > { %v1700_v57 = vpop.xlane.xlu0 %1699 }
 0x3d9   : > { %v4829_v62 = vmul.f32 0.0625, %v1700_v57  ;;  %v3517_v57 = vld [vmem:[#allocation11 + $0xf0] ss:$8 sps:$4 sm:$0xff]  }
 0x41c   : > { %v1734_v44 = vpop.xlane.xlu1 %1733 }
 0x41d   : > { %v4824_v46 = vmax.f32 %v1734_v44, %v4821_v40  ;;  %v3514_v44 = vld [vmem:[#allocation8 + $0x10] ss:$8 sps:$4 sm:$0xff]  }
 0x41f   : > { %v1740_v48 = vsub.f32 %v1681_v22, %v4824_v46  ;;  %v1746_v52 = vsub.f32 %v4821_v40, %v4824_v46  ;;  %v3496_v22 = vld [vmem:[#allocation8 + $0x40] ss:$8 sps:$4 sm:$0xff]  }
 0x420   : > { %2276 = vmatpush1.bf16.msra.mxu0 %v3496_v22 }
 0x421   : > { %v1742_v58 = vmul.f32 1.442695, %v1740_v48  ;;  %2277 = vmatprep.subr.bf16.mxu0 %v3504_v51  ;;  %v3519_v48 = vld [vmem:[#allocation11 + $0xf4] ss:$8 sps:$4 sm:$0xff]  }
 0x423   : > { %3574 = vpow2.f32 %v1742_v58  ;;  %v3600_v58 = vld [vmem:[%s4255_s11] sm:$0xff] }
 0x424   : > { %v1737_v4 = vpop.xlane.xlu1 %1736  ;;  %2278 = vmatpush1.bf16.msra.mxu0 %v3502_v63 }
 0x425   : > { %v4832_v7 = vmax.f32 %v1737_v4, %v4829_v62  ;;  %2279 = vmatprep.subr.bf16.mxu0 %v3510_v26  ;;  %v2015_v4 = vrot.slane %v3600_v58, 4  ;;  %v3543_v26 = vld [vmem:[#allocation11 + $0xb4] ss:$8 sps:$4 sm:$0xff]  }
 0x427   : > { %v1741_v8 = vsub.f32 %v1682_v16, %v4832_v7  ;;  %v1747_v10 = vsub.f32 %v4829_v62, %v4832_v7  ;;  %v3499_v16 = vld [vmem:[#allocation11 + $0x20] ss:$8 sps:$4 sm:$0xff]  }
 0x428   : > { %2280 = vmatpush1.bf16.msra.mxu0 %v3508_v32 }
 0x429   : > { %v1744_v11 = vmul.f32 1.442695, %v1741_v8  ;;  %2281 = vmatprep.subr.bf16.mxu0 %v3516_v38  ;;  %v3601_v8 = vld [vmem:[%s4255_s11 + $0x10] sm:$0xff] }
 0x42b   : > { %3576 = vpow2.f32 %v1744_v11  ;;  %v2027_v11 = vrot.slane %v3601_v8, 4 }
 0x42c   : > { %2282 = vmatpush1.bf16.msra.mxu0 %v3514_v44  ;;  %v3549_v44 = vld [vmem:[#allocation11 + $0xa4] ss:$8 sps:$4 sm:$0xff]  }
 0x42d   : > { %2283 = vmatprep.subr.bf16.mxu0 %v3522_v19  ;;  %v3555_v19 = vld [vmem:[#allocation11 + $0x94] ss:$8 sps:$4 sm:$0xff]  }
 0x430   : > { %v3575_v21 = vpop.eup %3574 }
 0x431   : > { %v1752_v23 = vsel %vm1731_vm2, %v3575_v21, 0.0  ;;  %v1762_v25 = vpack.c.bf16 %v3575_v21, %v3575_v21  ;;  %v3520_v21 = vld [vmem:[#allocation8] ss:$8 sps:$4 sm:$0xff]  }
 0x432   : > { %1753 = vadd.xlane.f32.xlu0 %v1752_v23  ;;  %v3602_v23 = vld [vmem:[%s4255_s11 + $0x8] sm:$0xff]  ;;  %2284 = vmatpush1.bf16.msra.mxu0 %v3520_v21 }
 0x433   : > { %3088 = vmatmul.mubr.msk.bf16.vlgmr.msra.gmra.mxu1 %vm1731_vm2, %v1762_v25  ;;  %v2021_v25 = vrot.slane %v3602_v23, 4 }
 0x434   : > { %1855 = vmatpush1.bf16.msra.mxu1 %v1835_v27  ;;  %1872 = vmatprep.mubr.bf16.mxu1 %v3943_v36  ;;  %v3511_v36 = vld [vmem:[#allocation11] ss:$8 sps:$4 sm:$0xff]   ;;  %v3525_v27 = vld [vmem:[#allocation11 + $0xe4] ss:$8 sps:$4 sm:$0xff]  }
 0x435   : > { %2545 = vmatprep.subr.bf16.mxu1 %v3474_v49  ;;  %v2022_v5 = vadd.f32 %v3602_v23, %v2021_v25  ;;  %v3553_v25 = vld [vmem:[#allocation11 + $0x90] ss:$8 sps:$4 sm:$0xff]  }
 0x437   : > { %v2023_v59 = vrot.slane %v2022_v5, 2 }
 0x438   : > { %v3577_v29 = vpop.eup %3576 }
 0x439   : > { %v1755_v6 = vsel %vm1731_vm2, %v3577_v29, 0.0  ;;  %v1763_v15 = vpack.c.bf16 %v3577_v29, %v3577_v29  ;;  %v3523_v29 = vld [vmem:[#allocation11 + $0xe0] ss:$8 sps:$4 sm:$0xff]   ;;  %v2024_v63 = vadd.f32 %v2023_v59, %v2022_v5  ;;  %v3564_v5 = vld [vmem:[#allocation8 + $0x94] ss:$8 sps:$4 sm:$0xff]  }
 0x43a   : > { %1756 = vadd.xlane.f32.xlu1 %v1755_v6  ;;  %v2016_v6 = vadd.f32 %v3600_v58, %v2015_v4  ;;  %v3552_v4 = vld [vmem:[#allocation8 + $0xb4] ss:$8 sps:$4 sm:$0xff]  }
 0x43b   : > { %3090 = vmatmul.mubr.msk.bf16.vlgmr.msra.gmra.mxu1 %vm1731_vm2, %v1763_v15  ;;  %v2028_v15 = vadd.f32 %v3601_v8, %v2027_v11  ;;  %v2025_v38 = vrot.slane %v2024_v63, 1  ;;  %v3550_v11 = vld [vmem:[#allocation8 + $0xb0] ss:$8 sps:$4 sm:$0xff]  }
 0x43c   : > { %2546 = vmatpush1.bf16.msra.mxu1 %v3472_v56  ;;  %v3603_v56 = vld [vmem:[%s4255_s11 + $0x18] sm:$0xff]  ;;  %s622_s11 = scalar_lea.vmem [#allocation17], %s2990_s7 }
 0x43d   : > { %2547 = vmatprep.subr.bf16.mxu1 %v3477_v53  ;;  %v2033_v49 = vrot.slane %v3603_v56, 4  ;;  %v3528_v53 = vld [vmem:[#allocation8 + $0xf4] ss:$8 sps:$4 sm:$0xff]   ;;  %v2029_v41 = vrot.slane %v2028_v15, 2  ;;  %v4852_v21 = vadd.f32 %v2025_v38, %v2024_v63  ;;  %s2803_s6 = sshll.u32 %s622_s11, 4  ;;  %s2804_s6 = int_to_ptr.vmem [resolvable:$true] %s2803_s6 }
 0x43e   : > { %2285 = vmatprep.subr.bf16.mxu0 %v3528_v53  ;;  %v3559_v53 = vld [vmem:[#allocation11 + $0x80] ss:$8 sps:$4 sm:$0xff]   ;;  %s3842_s25 = scalar_lea.vmem %s2804_s6, 32  ;;  %p3849_p9 = scmp.lt.s32.totalorder %s2804_s6, %s3847_s14 }
 0x43f   : > { %2286 = vmatpush2.bf16.msra.mxu0 %v3526_v1  ;;  %v2034_v37 = vadd.f32 %v3603_v56, %v2033_v49  ;;  %v2030_v22 = vadd.f32 %v2029_v41, %v2028_v15  ;;  %v3561_v1 = vld [vmem:[#allocation11 + $0x84] ss:$8 sps:$4 sm:$0xff]   ;;  %p3843_p7 = scmp.ne.s32.totalorder %s2804_s6, %s3842_s25  ;;  %p3850_p4 = scmp.lt.s32.totalorder %s3848_s19, %s3842_s25 }
 0x440   : > { %2548 = vmatpush1.bf16.msra.mxu1 %v3475_v45  ;;  %v3531_v45 = vld [vmem:[#allocation11 + $0xd4] ss:$8 sps:$4 sm:$0xff]  }
 0x441   : > { %2549 = vmatprep.subr.bf16.mxu1 %v3483_v60  ;;  %v2017_v60 = vrot.slane %v2016_v6, 2  ;;  %v2035_v51 = vrot.slane %v2034_v37, 2  ;;  %v2031_v32 = vrot.slane %v2030_v22, 1  ;;  %v3562_v41 = vld [vmem:[#allocation8 + $0x90] ss:$8 sps:$4 sm:$0xff]   ;;  %p3844_p13 = pnand %p3843_p7, %p5131_p11  ;;  %p3851_p3 = por %p3850_p4, %p3849_p9 }
 0x443   : > { %v4850_v58 = vadd.f32 %v2031_v32, %v2030_v22  ;;  %v1717_v22 = vpop.xlane.xlu1 %1716  ;;  %p3845_p6 = pneg %p3844_p13 }
 0x444   : > { %2550 = vmatpush1.bf16.msra.mxu1 %v3481_v35  ;;  %v3534_v35 = vld [vmem:[#allocation8 + $0xe4] ss:$8 sps:$4 sm:$0xff]  }
 0x445   : > { %2551 = vmatprep.subr.bf16.mxu1 %v3489_v39  ;;  %v3532_v39 = vld [vmem:[#allocation8 + $0xe0] ss:$8 sps:$4 sm:$0xff]   ;;  %2287 = vmatprep.subr.bf16.mxu0 %v3534_v35  ;;  %v2324_v49 = vpack.c.bf16 %v4850_v58, %v4850_v58  ;;  %p3852_p10 = pnand %p3851_p3, %p3845_p6 }
 0x446   : > { %2288 = vmatpush2.bf16.msra.mxu0 %v3532_v39  ;;  %v3567_v39 = vld [vmem:[#allocation8 + $0x84] ss:$8 sps:$4 sm:$0xff]  }
 0x448   : > { %2552 = vmatpush1.bf16.msra.mxu1 %v3487_v18  ;;  %v3535_v18 = vld [vmem:[#allocation11 + $0xc0] ss:$8 sps:$4 sm:$0xff]  }
 0x449   : > { %2553 = vmatprep.subr.bf16.mxu1 %v3495_v20  ;;  %v2018_v20 = vadd.f32 %v2017_v60, %v2016_v6  ;;  %v2323_v6 = vpack.c.bf16 %v4852_v21, %v4852_v21 }
 0x44c   : > { %2554 = vmatpush1.bf16.msra.mxu1 %v3493_v31  ;;  %v3540_v31 = vld [vmem:[#allocation8 + $0xd4] ss:$8 sps:$4 sm:$0xff]  }
 0x44d   : > { %2555 = vmatprep.subr.bf16.mxu1 %v3501_v24  ;;  %v3538_v24 = vld [vmem:[#allocation8 + $0xd0] ss:$8 sps:$4 sm:$0xff]   ;;  %2289 = vmatprep.subr.bf16.mxu0 %v3540_v31  ;;  %v1721_v31 = vmul.f32 0.0625, %v1717_v22 }
 0x44e   : > { %2290 = vmatpush2.bf16.msra.mxu0 %v3538_v24 }
 0x44f   : > { %v1889_v63 = vrot.slane %v1721_v31, 4 }
 0x450   : > { %2556 = vmatpush1.bf16.msra.mxu1 %v3499_v16  ;;  %v3541_v16 = vld [vmem:[#allocation11 + $0xb0] ss:$8 sps:$4 sm:$0xff]  }
 0x451   : > { %2557 = vmatprep.subr.bf16.mxu1 %v3507_v30  ;;  %v2019_v30 = vrot.slane %v2018_v20, 1 }
 0x454   : > { %2558 = vmatpush1.bf16.msra.mxu1 %v3505_v28  ;;  %v2036_v28 = vadd.f32 %v2035_v51, %v2034_v37  ;;  %v2377_v37 = vunpack.c.l.b16 %v2324_v49  ;;  %v1720_v51 = vpop.xlane.xlu0 %1719 }
 0x455   : > { %2559 = vmatprep.subr.bf16.mxu1 %v3513_v34  ;;  %v3546_v34 = vld [vmem:[#allocation8 + $0xc4] ss:$8 sps:$4 sm:$0xff]   ;;  %v1722_v24 = vmul.f32 0.0625, %v1720_v51 }
 0x456   : > { %2291 = vmatprep.subr.bf16.mxu0 %v3546_v34  ;;  %v2037_v8 = vrot.slane %v2036_v28, 1 }
 0x458   : > { %2560 = vmatpush1.bf16.msra.mxu1 %v3511_v36  ;;  %v3544_v36 = vld [vmem:[#allocation8 + $0xc0] ss:$8 sps:$4 sm:$0xff]   ;;  %v4854_v23 = vadd.f32 %v2037_v8, %v2036_v28 }
 0x459   : > { %2561 = vmatprep.subr.bf16.mxu1 %v3519_v48  ;;  %2292 = vmatpush2.bf16.msra.mxu0 %v3544_v36  ;;  %v3547_v48 = vld [vmem:[#allocation11 + $0xa0] ss:$8 sps:$4 sm:$0xff]  }
 0x45a   : > { %2293 = vmatprep.subr.bf16.mxu0 %v3552_v4  ;;  %v2325_v15 = vpack.c.bf16 %v4854_v23, %v4854_v23 }
 0x45c   : > { %2562 = vmatpush2.bf16.msra.mxu1 %v3517_v57  ;;  %v4848_v57 = vadd.f32 %v2019_v30, %v2018_v20  ;;  %v3565_v20 = vld [vmem:[#allocation8 + $0x80] ss:$8 sps:$4 sm:$0xff]  }
 0x45d   : > { %2563 = vmatprep.subr.bf16.mxu1 %v3525_v27  ;;  %2294 = vmatpush2.bf16.msra.mxu0 %v3550_v11  ;;  %v3556_v27 = vld [vmem:[#allocation8 + $0xa0] ss:$8 sps:$4 sm:$0xff]  }
 0x45e   : > { %v2322_v56 = vpack.c.bf16 %v4848_v57, %v4848_v57 }
 0x460   : > { %2564 = vmatpush2.bf16.msra.mxu1 %v3523_v29  ;;  %v3558_v29 = vld [vmem:[#allocation8 + $0xa4] ss:$8 sps:$4 sm:$0xff]   ;;  %v2375_v60 = vunpack.c.l.b16 %v2322_v56 }
 0x461   : > { %2565 = vmatprep.subr.bf16.mxu1 %v3531_v45  ;;  %2295 = vmatprep.subr.bf16.mxu0 %v3558_v29  ;;  %v2376_v45 = vunpack.c.l.b16 %v2323_v6 }
 0x462   : > { %2296 = vmatpush2.bf16.msra.mxu0 %v3556_v27 }
 0x463   : > { %2297 = vmatprep.subr.bf16.mxu0 %v3564_v5 }
 0x464   : > { %2566 = vmatpush2.bf16.msra.mxu1 %v3529_v61  ;;  %v2378_v61 = vunpack.c.l.b16 %v2325_v15 }
 0x465   : > { %2567 = vmatprep.subr.bf16.mxu1 %v3537_v9  ;;  %v2379_v9 = vsel %vm2101_vm3, %v2377_v37, %v2375_v60 }
 0x466   : > { %v2380_v35 = vsel %vm2101_vm3, %v2378_v61, %v2376_v45  ;;  %2298 = vmatpush2.bf16.msra.mxu0 %v3562_v41  ;;  %v1750_v45 = vmul.f32 1.442695, %v1747_v10 }
 0x467   : > { %v2382_v59 = vpack.c.b16 %v2380_v35, %v2380_v35  ;;  %2299 = vmatprep.subr.bf16.mxu0 %v3567_v39 }
 0x468   : > { %2568 = vmatpush2.bf16.msra.mxu1 %v3535_v18  ;;  %v2381_v18 = vpack.c.b16 %v2379_v9, %v2379_v9 }
 0x469   : > { %2569 = vmatprep.subr.bf16.mxu1 %v3543_v26  ;;  %2577 = vmatprep.mubr.bf16.mxu1 %v2382_v59  ;;  %v1895_v26 = vrot.slane %v1722_v24, 4 }
 0x46a   : > { %2300 = vmatpush2.bf16.msra.mxu0 %v3565_v20 }
 0x46b   : > { %v1896_v30 = vmax.f32 %v1722_v24, %v1895_v26 }
 0x46c   : > { %2570 = vmatpush2.bf16.msra.mxu1 %v3541_v16  ;;  %v1890_v16 = vmax.f32 %v1721_v31, %v1889_v63 }
 0x46d   : > { %2571 = vmatprep.subr.bf16.mxu1 %v3549_v44  ;;  %v1897_v28 = vrot.slane %v1896_v30, 2 }
 0x46e   : > { %v1891_v32 = vrot.slane %v1890_v16, 2 }
 0x46f   : > { %v1898_v36 = vmax.f32 %v1896_v30, %v1897_v28 }
 0x470   : > { %2572 = vmatpush2.bf16.msra.mxu1 %v3547_v48  ;;  %v1892_v34 = vmax.f32 %v1890_v16, %v1891_v32  ;;  %v1729_v48 = vpop.xlane.xlu0 %1728 }
 0x471   : > { %2573 = vmatprep.subr.bf16.mxu1 %v3555_v19  ;;  %v1899_v44 = vrot.slane %v1898_v36, 1  ;;  %v1730_v11 = vmul.f32 0.0625, %v1729_v48  ;;  %v1771_v48 = vrot.slane %v4812_v13, %v4284_v2 }
 0x472   : > { %v1893_v38 = vrot.slane %v1892_v34, 1 }
 0x473   : > { %v1900_v8 = vmax.f32 %v1898_v36, %v1899_v44 }
 0x474   : > { %2574 = vmatpush2.bf16.msra.mxu1 %v3553_v25  ;;  %v1894_v4 = vmax.f32 %v1892_v34, %v1893_v38 }
 0x475   : > { %2575 = vmatprep.subr.bf16.mxu1 %v3561_v1  ;;  %v1902_v25 = vmax.f32 %v1900_v8, %v1730_v11 }
 0x476   : > { %v1901_v19 = vmax.f32 %v1894_v4, %v1730_v11 }
 0x477   : > { %v1910_v29 = vrot.slane %v1902_v25, %v4284_v2  ;;  %v1918_v37 = vsub.f32 %v1730_v11, %v1902_v25 }
 0x478   : > { %2576 = vmatpush2.bf16.msra.mxu1 %v3559_v53  ;;  %v1906_v27 = vrot.slane %v1901_v19, %v4284_v2  ;;  %v1748_v53 = vmul.f32 1.442695, %v1746_v52  ;;  %v1917_v41 = vsub.f32 %v1730_v11, %v1901_v19 }
 0x479   : > { %v1912_v15 = vsub.f32 %v1722_v24, %v1910_v29  ;;  %v1921_v9 = vmul.f32 1.442695, %v1918_v37 }
 0x47a   : > { %v1911_v6 = vsub.f32 %v1721_v31, %v1906_v27  ;;  %v1919_v59 = vmul.f32 1.442695, %v1917_v41 }
 0x47b   : > { %2578 = vmatmul.mubr.bf16.vlgmr.msra.gmra.mxu1 %v2381_v18  ;;  %v1915_v49 = vmul.f32 1.442695, %v1912_v15 }
 0x47c   : > { %v1913_v56 = vmul.f32 1.442695, %v1911_v6 }
 0x47e   : > { %3578 = vpow2.f32 %v1913_v56 }
 0x47f   : > { %3580 = vpow2.f32 %v1915_v49 }
 0x480   : > { %3582 = vpow2.f32 %v1748_v53 }
 0x481   : > { %3584 = vpow2.f32 %v1750_v45 }
 0x482   : > { %3586 = vpow2.f32 %v1919_v59 }
 0x483   : > { %3588 = vpow2.f32 %v1921_v9 }
 0x48b   : > { %v3579_v1 = vpop.eup %3578 }
 0x48c   : > { %v3581_v5 = vpop.eup %3580  ;;  %v1923_v61 = vrot.slane %v3579_v1, 4  ;;  %v1939_v62 = vmul.f32 %v3579_v1, %v4792_v42  ;;  %v1940_v31 = vmul.f32 %v3579_v1, %v4797_v50 }
 0x48d   : > { %v1929_v60 = vrot.slane %v3581_v5, 4  ;;  %v3583_v40 = vpop.eup %3582  ;;  %v1941_v51 = vmul.f32 %v3581_v5, %v4802_v0  ;;  %v1942_v30 = vmul.f32 %v3581_v5, %v4806_v17  ;;  %v1775_v17 = vrot.slane %v4815_v47, %v4284_v2 }
 0x48e   : > { %v1924_v35 = vadd.f32 %v3579_v1, %v1923_v61  ;;  %v3585_v63 = vpop.eup %3584  ;;  %v1943_v26 = vrot.slane %v1939_v62, 4  ;;  %v1949_v34 = vrot.slane %v1940_v31, 4  ;;  %v1776_v11 = vmul.f32 %v3583_v40, %v1771_v48 }
 0x48f   : > { %v1930_v39 = vadd.f32 %v3581_v5, %v1929_v60  ;;  %v1955_v28 = vrot.slane %v1941_v51, 4  ;;  %v1961_v42 = vrot.slane %v1942_v30, 4  ;;  %v4880_v0 = vpop.eup %3586  ;;  %v1777_v56 = vmul.f32 %v3583_v40, %v1775_v17 }
 0x490   : > { %v1925_v20 = vrot.slane %v1924_v35, 2  ;;  %v1944_v38 = vadd.f32 %v1943_v26, %v1939_v62  ;;  %v1950_v4 = vadd.f32 %v1949_v34, %v1940_v31  ;;  %v4882_v8 = vpop.eup %3588  ;;  %v1779_v31 = vmul.f32 %v3585_v63, %v1775_v17 }
 0x491   : > { %v1931_v46 = vrot.slane %v1930_v39, 2  ;;  %v1956_v50 = vadd.f32 %v1955_v28, %v1941_v51  ;;  %v1962_v6 = vadd.f32 %v1961_v42, %v1942_v30 }
 0x492   : > { %v1926_v22 = vadd.f32 %v1925_v20, %v1924_v35  ;;  %v1945_v27 = vrot.slane %v1944_v38, 2  ;;  %v1951_v5 = vrot.slane %v1950_v4, 2 }
 0x493   : > { %v1932_v7 = vadd.f32 %v1931_v46, %v1930_v39  ;;  %v1957_v1 = vrot.slane %v1956_v50, 2  ;;  %v1963_v37 = vrot.slane %v1962_v6, 2  ;;  %v1778_v46 = vmul.f32 %v3585_v63, %v1771_v48 }
 0x494   : > { %v1927_v24 = vrot.slane %v1926_v22, 1  ;;  %v1946_v60 = vadd.f32 %v1945_v27, %v1944_v38 }
 0x495   : > { %v1933_v16 = vrot.slane %v1932_v7, 1  ;;  %v1958_v9 = vadd.f32 %v1957_v1, %v1956_v50  ;;  %v1964_v62 = vadd.f32 %v1963_v37, %v1962_v6  ;;  %v1969_v6 = vmul.f32 %v4882_v8, %v4812_v13 }
 0x496   : > { %v1928_v36 = vadd.f32 %v1927_v24, %v1926_v22 }
 0x497   : > { %v1934_v44 = vadd.f32 %v1933_v16, %v1932_v7  ;;  %v1959_v26 = vrot.slane %v1958_v9, 1 }
 0x498   : > { %v1935_v19 = vadd.f32 %v4880_v0, %v1928_v36 }
 0x499   : > { %v1936_v29 = vadd.f32 %v4882_v8, %v1934_v44  ;;  %v1965_v44 = vrot.slane %v1964_v62, 1 }
 0x4bb   : > { %v1754_v18 = vpop.xlane.xlu0 %1753 }
 0x4bc   : > { %v1758_v52 = vadd.f32 %v3583_v40, %v1754_v18  ;;  %v1952_v18 = vadd.f32 %v1951_v5, %v1950_v4  ;;  %v1960_v4 = vadd.f32 %v1959_v26, %v1958_v9 }
 0x4be   : > { %3590 = vrcp.f32 %v1758_v52  ;;  %v1947_v52 = vrot.slane %v1946_v60, 1  ;;  %v1953_v30 = vrot.slane %v1952_v18, 1 }
 0x4c0   : > { %v1948_v36 = vadd.f32 %v1947_v52, %v1946_v60 }
 0x4c3   : > { %v1757_v10 = vpop.xlane.xlu1 %1756 }
 0x4c4   : > { %v1759_v32 = vadd.f32 %v3585_v63, %v1757_v10  ;;  %v1967_v63 = vmul.f32 %v4880_v0, %v4812_v13 }
 0x4c6   : > { %3592 = vrcp.f32 %v1759_v32 }
 0x4c7   : > { %3594 = vrcp.f32 %v1935_v19  ;;  %v1954_v19 = vadd.f32 %v1953_v30, %v1952_v18 }
 0x4c8   : > { %3596 = vrcp.f32 %v1936_v29 }
 0x4cb   : > { %v3591_v49 = vpop.eup %3590 }
 0x4d3   : > { %v3593_v24 = vpop.eup %3592 }
 0x4d4   : > { %v3595_v29 = vpop.eup %3594 }
 0x4f3   : > { %v1824_v25 = vpop.f32.mrf.mxu1 }
 0x4f4   : > { %v1825_v15 = vadd.f32 %v1824_v25, %v1776_v11 }
 0x4f5   : > { %v1826_v53 = vpop.f32.mrf.mxu1 }
 0x4f6   : > { %v1881_v45 = vmul.f32 %v3591_v49, %v1825_v15  ;;  %v1827_v61 = vadd.f32 %v1826_v53, %v1777_v56  ;;  %v1966_v15 = vadd.f32 %v1965_v44, %v1964_v62  ;;  %v1968_v56 = vmul.f32 %v4880_v0, %v4815_v47 }
 0x4f7   : > { %v1828_v41 = vpop.f32.mrf.mxu1 }
 0x4f8   : > { %v1885_v35 = vadd.f32 %v1881_v45, %v4565_v43  ;;  %v1882_v39 = vmul.f32 %v3591_v49, %v1827_v61  ;;  %v1971_v49 = vadd.f32 %v1967_v63, %v1948_v36  ;;  %v1973_v45 = vadd.f32 %v1969_v6, %v1960_v4 }
 0x4f9   : > { %v1829_v59 = vpop.f32.mrf.mxu1  ;;  %v1970_v61 = vmul.f32 %v4882_v8, %v4815_v47  ;;  %v1972_v60 = vadd.f32 %v1968_v56, %v1954_v19 }
 0x4fa   : > { %v1983_v20 = vrot.slane %v1885_v35, 4  ;;  %v1886_v40 = vadd.f32 %v1882_v39, %v4561_v55  ;;  %v1975_v41 = vmul.f32 %v3595_v29, %v1971_v49 }
 0x4fb   : > { %v1874_v22 = vpop.f32.mrf.mxu1  ;;  %v1974_v13 = vadd.f32 %v1970_v61, %v1966_v15  ;;  %v1976_v0 = vmul.f32 %v3595_v29, %v1972_v60  ;;  %v2589_v29 = vld [vmem:[%s4262_s20 + $0x18] sm:$0xff] }
 0x4fc   : > { %v1984_v7 = vadd.f32 %v1983_v20, %v1885_v35  ;;  %v1989_v10 = vrot.slane %v1886_v40, 4  ;;  %v1875_v51 = vadd.f32 %v1874_v22, %v1778_v46 }
 0x4fd   : > { %v1876_v16 = vpop.f32.mrf.mxu1 }
 0x4fe   : > { %v1985_v43 = vrot.slane %v1984_v7, 2  ;;  %v1990_v32 = vadd.f32 %v1989_v10, %v1886_v40  ;;  %v1883_v28 = vmul.f32 %v3593_v24, %v1875_v51  ;;  %v1877_v34 = vadd.f32 %v1876_v16, %v1779_v31 }
 0x4ff   : > { %v1878_v38 = vpop.f32.mrf.mxu1  ;;  %v1979_v40 = vadd.f32 %v1975_v41, %v4714_v14  ;;  %v1980_v10 = vadd.f32 %v1976_v0, %v4603_v12 }
 0x500   : > { %v1986_v55 = vadd.f32 %v1985_v43, %v1984_v7  ;;  %v1991_v42 = vrot.slane %v1990_v32, 2  ;;  %v1887_v48 = vadd.f32 %v1883_v28, %v4567_v54  ;;  %v1884_v50 = vmul.f32 %v3593_v24, %v1877_v34  ;;  %v3597_v54 = vpop.eup %3596 }
 0x501   : > { %v1879_v11 = vpop.f32.mrf.mxu1  ;;  %v1977_v39 = vmul.f32 %v3597_v54, %v1973_v45  ;;  %v1978_v20 = vmul.f32 %v3597_v54, %v1974_v13  ;;  %v2608_v54 = vrot.slane %v2589_v29, 4 }
 0x502   : > { %v1992_v17 = vadd.f32 %v1991_v42, %v1990_v32  ;;  %v1995_v25 = vrot.slane %v1887_v48, 4  ;;  %v1888_v27 = vadd.f32 %v1884_v50, %v4563_v33  ;;  %v1987_v53 = vrot.slane %v1986_v55, 1 }
 0x503   : > { %v1981_v62 = vadd.f32 %v1977_v39, %v4714_v14  ;;  %v1982_v24 = vadd.f32 %v1978_v20, %v4603_v12  ;;  %v2609_v45 = vadd.f32 %v2608_v54, %v2589_v29  ;;  %v5127_v39 = vld [vmem:[#allocation26_spill] sm:$0xff]  ;;  %v5128_v20 = vld [vmem:[#allocation27_spill] sm:$0xff]  ;;  %v2710_v54 = vld [vmem:[#allocation14 + $0xf8] sm:$0xff] }
 0x504   : > { %v1996_v1 = vadd.f32 %v1995_v25, %v1887_v48  ;;  %v2001_v5 = vrot.slane %v1888_v27, 4  ;;  %v1993_v33 = vrot.slane %v1992_v17, 1  ;;  %v1988_v59 = vadd.f32 %v1987_v53, %v1986_v55  ;;  %v2588_v25 = vld [vmem:[%s4262_s20 + $0x10] sm:$0xff]  ;;  %3164 = vmatprep.subr.mxu0 %v2710_v54 }
 0x505   : > { %v2602_v15 = vrot.slane %v2588_v25, 4  ;;  %v2041_v13 = vadd.f32 %v4850_v58, %v5127_v39 }
 0x506   : > { %v1997_v37 = vrot.slane %v1996_v1, 2  ;;  %v2002_v35 = vadd.f32 %v2001_v5, %v1888_v27  ;;  %v1994_v46 = vadd.f32 %v1993_v33, %v1992_v17  ;;  %v2011_v47 = vadd.f32 %v1988_v59, %v1979_v40  ;;  %v2586_v17 = vld [vmem:[%s4262_s20] sm:$0xff]  ;;  %v2587_v27 = vld [vmem:[%s4262_s20 + $0x8] sm:$0xff] }
 0x507   : > { %v2590_v6 = vrot.slane %v2586_v17, 4  ;;  %v2596_v56 = vrot.slane %v2587_v27, 4  ;;  %v2603_v53 = vadd.f32 %v2602_v15, %v2588_v25  ;;  %v2079_v33 = vld [vmem:[#allocation10] sm:$0x3]  ;;  %v2042_v40 = vadd.f32 %v4854_v23, %v5128_v20 }
 0x508   : > { %v1998_v9 = vadd.f32 %v1997_v37, %v1996_v1  ;;  %v2003_v18 = vrot.slane %v2002_v35, 2  ;;  %v2012_v26 = vadd.f32 %v1994_v46, %v1980_v10  ;;  %v2043_v43 = vpack.c.bf16 %v2011_v47, %v2011_v47  ;;  %v2358_v1 = vld [vmem:[#allocation13] sm:$0x3] }
 0x509   : > { %v2591_v49 = vadd.f32 %v2590_v6, %v2586_v17  ;;  %v2597_v5 = vadd.f32 %v2596_v56, %v2587_v27  ;;  %v2604_v60 = vrot.slane %v2603_v53, 2  ;;  %v2359_v41 = vmul.f32 8.0, %v2358_v1  ;;  %v2693_v1 = vld [vmem:[#allocation14 + $0x70] sm:$0xff] }
 0x50a   : > { %v1999_v52 = vrot.slane %v1998_v9, 1  ;;  %v2004_v22 = vadd.f32 %v2003_v18, %v2002_v35  ;;  %v2044_v32 = vpack.c.bf16 %v2012_v26, %v2012_v26  ;;  %v2096_v14 = vunpack.c.l.b16 %v2043_v43 }
 0x50b   : > { %v2592_v61 = vrot.slane %v2591_v49, 2  ;;  %v2598_v37 = vrot.slane %v2597_v5, 2  ;;  %v2610_v35 = vrot.slane %v2609_v45, 2  ;;  %v2364_v18 = vrot.slane %v2359_v41, %v4284_v2 }
 0x50c   : > { %v2000_v8 = vadd.f32 %v1999_v52, %v1998_v9  ;;  %v2005_v7 = vrot.slane %v2004_v22, 1  ;;  %v2097_v44 = vunpack.c.l.b16 %v2044_v32  ;;  %v2605_v9 = vadd.f32 %v2604_v60, %v2603_v53  ;;  %v2709_v53 = vld [vmem:[#allocation14 + $0xf0] sm:$0xff] }
 0x50d   : > { %v2593_v59 = vadd.f32 %v2592_v61, %v2591_v49  ;;  %v2080_v0 = vmul.f32 9.0, %v2079_v33  ;;  %v2599_v46 = vadd.f32 %v2598_v37, %v2597_v5  ;;  %v2611_v52 = vadd.f32 %v2610_v35, %v2609_v45  ;;  %v2694_v49 = vld [vmem:[#allocation14 + $0x78] sm:$0xff]  ;;  %v2708_v5 = vld [vmem:[#allocation14 + $0xe8] sm:$0xff]  ;;  %v2707_v61 = vld [vmem:[#allocation14 + $0xe0] sm:$0xff] }
 0x50e   : > { %v2013_v51 = vadd.f32 %v2000_v8, %v1981_v62  ;;  %v2006_v31 = vadd.f32 %v2005_v7, %v2004_v22  ;;  %v2039_v22 = vadd.f32 %v4848_v57, %v5127_v39  ;;  %v2314_v62 = vrot.slane %v2041_v13, 7  ;;  %v2692_v45 = vld [vmem:[#allocation14 + $0x68] sm:$0xff] }
 0x50f   : > { %v2594_v47 = vrot.slane %v2593_v59, 1  ;;  %v2606_v8 = vrot.slane %v2605_v9, 1  ;;  %v2368_v10 = vrot.slane %v2359_v41, %v4286_v3  ;;  %v2085_v58 = vrot.slane %v2080_v0, %v4284_v2 }
 0x510   : > { %v2045_v16 = vpack.c.bf16 %v2013_v51, %v2013_v51  ;;  %v2014_v30 = vadd.f32 %v2006_v31, %v1982_v24  ;;  %v2040_v51 = vadd.f32 %v4852_v21, %v5128_v20  ;;  %v2316_v31 = vrot.slane %v2042_v40, 7  ;;  %v2690_v20 = vld [vmem:[#allocation14 + $0x58] sm:$0xff]  ;;  %v2705_v40 = vld [vmem:[#allocation14 + $0xd0] sm:$0xff] }
 0x511   : > { %v2600_v24 = vrot.slane %v2599_v46, 1  ;;  %v2612_v26 = vrot.slane %v2611_v52, 1  ;;  %v2089_v23 = vrot.slane %v2080_v0, %v4286_v3  ;;  %v2595_v57 = vadd.f32 %v2594_v47, %v2593_v59  ;;  %v2706_v0 = vld [vmem:[#allocation14 + $0xd8] sm:$0xff]  ;;  %v2687_v47 = vld [vmem:[#allocation14 + $0x40] sm:$0xff] }
 0x512   : > { %v2046_v28 = vpack.c.bf16 %v2014_v30, %v2014_v30  ;;  %v2098_v34 = vunpack.c.l.b16 %v2045_v16  ;;  %v2315_v30 = vsel %vm2101_vm3, %v2314_v62, %v2039_v22  ;;  %v2607_v43 = vadd.f32 %v2606_v8, %v2605_v9  ;;  %v2688_v22 = vld [vmem:[#allocation14 + $0x48] sm:$0xff]  ;;  %v2703_v62 = vld [vmem:[#allocation14 + $0xc0] sm:$0xff]  ;;  %v2702_v8 = vld [vmem:[#allocation14 + $0xb8] sm:$0xff] }
 0x514   : > { %v2099_v36 = vunpack.c.l.b16 %v2046_v28  ;;  %v2100_v38 = vrot.slane %v2098_v34, 7 }
 0x516   : > { %v2103_v55 = vrot.slane %v2099_v36, 7  ;;  %v2102_v42 = vsel %vm2101_vm3, %v2100_v38, %v2096_v14  ;;  %v2317_v14 = vsel %vm2101_vm3, %v2316_v31, %v2040_v51  ;;  %v2601_v38 = vadd.f32 %v2600_v24, %v2599_v46  ;;  %v2689_v46 = vld [vmem:[#allocation14 + $0x50] sm:$0xff]  ;;  %v2700_v51 = vld [vmem:[#allocation14 + $0xa8] sm:$0xff]  ;;  %v2699_v24 = vld [vmem:[#allocation14 + $0xa0] sm:$0xff] }
 0x517   : > { %v2105_v50 = vpack.c.b16 %v2102_v42, %v2102_v42  ;;  %v2684_v31 = vld [vmem:[#allocation14 + $0x28] sm:$0xff] }
 0x518   : > { %v2104_v12 = vsel %vm2101_vm3, %v2103_v55, %v2097_v44  ;;  %v2613_v44 = vadd.f32 %v2612_v26, %v2611_v52  ;;  %v2704_v52 = vld [vmem:[#allocation14 + $0xc8] sm:$0xff]  ;;  %v2683_v26 = vld [vmem:[#allocation14 + $0x20] sm:$0xff] }
 0x519   : > { %v2106_v48 = vpack.c.b16 %v2104_v12, %v2104_v12  ;;  %v2622_v12 = vsel %vm2101_vm3, %v2607_v43, %v2595_v57  ;;  %v2681_v57 = vld [vmem:[#allocation14 + $0x10] sm:$0xff]  ;;  %v2696_v43 = vld [vmem:[#allocation14 + $0x88] sm:$0xff] }
 0x51b   : > { %2301 = vmatprep.mubr.bf16.mxu0 %v2106_v48 }
 0x51c   : > { %2302 = vmatmul.mubr.bf16.vlgmr.msra.gmra.mxu0 %v2105_v50 }
 0x51d   : > { %3165 = vmatpush3.msra.mxu0 %v2694_v49 }
 0x51e   : > { %3166 = vmatprep.subr.mxu0 %v2709_v53 }
 0x51f   : > { %3167 = vmatpush3.msra.mxu0 %v2693_v1 }
 0x520   : > { %3168 = vmatprep.subr.mxu0 %v2708_v5 }
 0x521   : > { %3169 = vmatpush3.msra.mxu0 %v2692_v45 }
 0x522   : > { %3170 = vmatprep.subr.mxu0 %v2707_v61 }
 0x53b   : > { %v2579_v4 = vpop.f32.mrf.mxu1 }
 0x53c   : > { %v2580_v7 = vadd.f32 %v2579_v4, %v2364_v18  ;;  %v2691_v18 = vld [vmem:[#allocation14 + $0x60] sm:$0xff] }
 0x53d   : > { %v2581_v11 = vpop.f32.mrf.mxu1  ;;  %3171 = vmatpush3.msra.mxu0 %v2691_v18 }
 0x53e   : > { %v2614_v32 = vmul.f32 8.0, %v2580_v7  ;;  %v2582_v28 = vadd.f32 %v2581_v11, %v2368_v10  ;;  %3172 = vmatprep.subr.mxu0 %v2706_v0  ;;  %v2686_v7 = vld [vmem:[#allocation14 + $0x38] sm:$0xff]  ;;  %v2701_v10 = vld [vmem:[#allocation14 + $0xb0] sm:$0xff] }
 0x53f   : > { %v2583_v19 = vpop.f32.mrf.mxu1  ;;  %3173 = vmatpush3.msra.mxu0 %v2690_v20 }
 0x540   : > { %v2615_v48 = vmul.f32 8.0, %v2582_v28  ;;  %3174 = vmatprep.subr.mxu0 %v2705_v40  ;;  %v2695_v28 = vld [vmem:[#allocation14 + $0x80] sm:$0xff] }
 0x541   : > { %v2584_v63 = vpop.f32.mrf.mxu1  ;;  %3175 = vmatpush3.msra.mxu0 %v2689_v46 }
 0x542   : > { %v2623_v63 = vsel %vm2101_vm3, %v2613_v44, %v2601_v38  ;;  %3176 = vmatprep.subr.mxu0 %v2704_v52  ;;  %v2630_v44 = vld [vmem:[%s4996_s10] sm:$0x3] }
 0x543   : > { %3177 = vmatpush3.msra.mxu0 %v2688_v22 }
 0x544   : > { %3178 = vmatprep.subr.mxu0 %v2703_v62 }
 0x545   : > { %3179 = vmatpush3.msra.mxu0 %v2687_v47 }
 0x546   : > { %3180 = vmatprep.subr.mxu0 %v2702_v8 }
 0x547   : > { %3181 = vmatpush3.msra.mxu0 %v2686_v7 }
 0x548   : > { %3182 = vmatprep.subr.mxu0 %v2701_v10 }
 0x5dc   : > { %v2303_v16 = vpop.f32.mrf.mxu0 }
 0x5dd   : > { %v2304_v34 = vadd.f32 %v2303_v16, %v2085_v58  ;;  %v2685_v58 = vld [vmem:[#allocation14 + $0x30] sm:$0xff]  ;;  %v2682_v16 = vld [vmem:[#allocation14 + $0x18] sm:$0xff] }
 0x5de   : > { %v2305_v36 = vpop.f32.mrf.mxu0  ;;  %3183 = vmatpush3.msra.mxu0 %v2685_v58 }
 0x5df   : > { %v2320_v55 = vadd.f32 %v2315_v30, %v2304_v34  ;;  %v2306_v21 = vadd.f32 %v2305_v36, %v2089_v23  ;;  %3184 = vmatprep.subr.mxu0 %v2700_v51  ;;  %v2698_v23 = vld [vmem:[#allocation14 + $0x98] sm:$0xff]  ;;  %v2697_v30 = vld [vmem:[#allocation14 + $0x90] sm:$0xff]  ;;  %v2679_v34 = vld [vmem:[#allocation14] sm:$0xff] }
 0x5e0   : > { %v2307_v42 = vpop.f32.mrf.mxu0  ;;  %3185 = vmatpush3.msra.mxu0 %v2684_v31 }
 0x5e1   : > { %v2616_v50 = vadd.f32 %v2614_v32, %v2320_v55  ;;  %v2321_v4 = vadd.f32 %v2317_v14, %v2306_v21  ;;  %3186 = vmatprep.subr.mxu0 %v2699_v24  ;;  %v2680_v32 = vld [vmem:[#allocation14 + $0x8] sm:$0xff]  ;;  %v2631_v55 = vld [vmem:[%s5129_s5] sm:$0x3]  ;;  %v2657_v21 = vrot.slane %v2630_v44, %v4284_v2  ;;  %v2661_v42 = vrot.slane %v2630_v44, %v4286_v3 }
 0x5e2   : > { %v2308_v19 = vpop.f32.mrf.mxu0  ;;  %3187 = vmatpush3.msra.mxu0 %v2683_v26 }
 0x5e3   : > { %v2617_v17 = vadd.f32 %v2615_v48, %v2321_v4  ;;  %v2626_v25 = vadd.f32 %v2622_v12, %v2616_v50  ;;  %3188 = vmatprep.subr.mxu0 %v2698_v23  ;;  %v2670_v50 = vrot.slane %v2631_v55, %v4284_v2  ;;  %v2674_v4 = vrot.slane %v2631_v55, %v4286_v3 }
 0x5e4   : > { %3189 = vmatpush3.msra.mxu0 %v2682_v16 }
 0x5e5   : > { %v2627_v11 = vadd.f32 %v2623_v63, %v2617_v17  ;;  %v2628_v27 = vmul.f32 0.04, %v2626_v25  ;;  %3190 = vmatprep.subr.mxu0 %v2697_v30 }
 0x5e6   : > { %3191 = vmatpush3.msra.mxu0 %v2681_v57 }
 0x5e7   : > { %v2629_v29 = vmul.f32 0.04, %v2627_v11  ;;  %v2633_v6 = vsel %vm2632_vm4, %v2628_v27, 0.0  ;;  %3192 = vmatprep.subr.mxu0 %v2696_v43 }
 0x5e8   : > { %3193 = vmatpush3.msra.mxu0 %v2680_v32 }
 0x5e9   : > { %v2634_v15 = vsel %vm2632_vm4, %v2629_v29, 0.0  ;;  %3194 = vmatprep.subr.mxu0 %v2695_v28 }
 0x5ea   : > { %v2635_v56 = vadd.f32 %v2634_v15, %v2633_v6  ;;  %3195 = vmatpush3.msra.mxu0 %v2679_v34 }
 0x5ec   : > { %2636 = vadd.xlane.f32.xlu1 %v2635_v56 }
 0x675   : > { %v2637_v60 = vpop.xlane.xlu1 %2636 }
 0x676   : > { %v2638_v41 = vmul.f32 0.00390625, %v2637_v60 }
 0x678   : > { %v4928_v33 = vsub.f32 %v2628_v27, %v2638_v41  ;;  %v4930_v37 = vsub.f32 %v2629_v29, %v2638_v41  ;;  %v3155_v29 = vld [vmem:[#allocation16] ss:$0 sm:$0xff] }
 0x67a   : > { %v2641_v35 = vmul.f32 %v4928_v33, %v4928_v33  ;;  %v2642_v39 = vmul.f32 %v4930_v37, %v4930_v37 }
 0x67c   : > { %v2643_v13 = vsel %vm2632_vm4, %v2641_v35, 0.0  ;;  %v2644_v59 = vsel %vm2632_vm4, %v2642_v39, 0.0 }
 0x67d   : > { %v2645_v9 = vadd.f32 %v2644_v59, %v2643_v13 }
 0x67f   : > { %2646 = vadd.xlane.f32.xlu0 %v2645_v9 }
 0x708   : > { %v2647_v36 = vpop.xlane.xlu0 %2646 }
 0x709   : > { %v2648_v14 = vmul.f32 0.00390625, %v2647_v36 }
 0x70b   : > { %v2649_v38 = vadd.f32 1e-05, %v2648_v14 }
 0x70d   : > { %3598 = vrsqrt.f32 %v2649_v38 }
 0x71a   : > { %v3599_v12 = vpop.eup %3598 }
 0x71b   : > { %v2652_v48 = vmul.f32 %v3599_v12, %v4930_v37  ;;  %v2651_v19 = vmul.f32 %v3599_v12, %v4928_v33 }
 0x71d   : > { %v2665_v63 = vmul.f32 %v2661_v42, %v2652_v48  ;;  %v2664_v17 = vmul.f32 %v2657_v21, %v2651_v19 }
 0x71f   : > { %v2678_v25 = vadd.f32 %v2674_v4, %v2665_v63  ;;  %v2677_v11 = vadd.f32 %v2670_v50, %v2664_v17 }
 0x721   : > { %2782 = vmatprep.mubr.f32.mxu0 %v2678_v25 }
 0x722   : > { %2783 = vmatmul.mubr.f32.vlgmr.msra.gmra.mxu0 %v2677_v11 }
 0x7e2   : > { %v3196_v27 = vpop.f32.mrf.mxu0 }
 0x7e4   : > { %v3197_v6 = vpop.f32.mrf.mxu0 }
 0x7e5   : > { %v3198_v2 = vadd.f32 %v3197_v6, %v3196_v27 }
 0x7e7   : > { %v2785_v15 = vadd.f32 %v3198_v2, %v3155_v29 }
 0x7e9   : > { %2788 = vst [vmem:[%s622_s11] sm:$0x3] %v2785_v15 }
 0x7ea   : > { %3855 = shalt.err (!%p3852_p10)
}
 0x7eb   : > { %s3856_s12 = scalar_lea.hbm %s2801_s8, 32  ;;  %s3860_s28 = scalar_lea.hbm %s5130_s24, 64 }
 0x7ec   : > { %p3857_p8 = scmp.ne.s32.totalorder %s2801_s8, %s3856_s12  ;;  %p3861_p2 = scmp.lt.s32.totalorder %s2801_s8, %s5130_s24 }
 0x7ed   : > { %p3862_p5 = scmp.lt.s32.totalorder %s3860_s28, %s3856_s12 }
 0x7ee   : > { %p3858_p12 = pnand %p3857_p8, %p5131_p11 }
 0x7ef   : > { %p3863_p1 = por %p3862_p5, %p3861_p2 }
 0x7f0   : > { %p3859_p0 = pneg %p3858_p12 }
 0x7f2   : > { %p3864_p7 = pnand %p3863_p1, %p3859_p0 }
 0x7f4   : > { %3867 = shalt.err (!%p3864_p7)
}
 0x7f5   : > { %3231 = dma.vmem_to_hbm [thread:$0]  (%p5131_p11), %s2804_s6, 32, %s2801_s8, %s2790_s9  }
 0x7f6 PF: > { %s2815_s7 = sand.u32 1, %s3914_s29   ;;  %p5132_p13 = scmp.ne.s32.totalorder %s5060_s17, 0 }
 0x7f7   : > { %p5133_p6 = scmp.ge.s32.totalorder %s3926_s16, 2  ;;  %s2816_s22 = scalar_lea.sflag [#allocation4], %s2815_s7 }
 0x7f9   : > { %p3263_p9 = pnand %p5133_p6, %p5132_p13 }
 0x7fb   : > { %p3264_p4 = pneg %p3263_p9 }
 0x7fd   : > { %3909 = dma.done.wait (%p3264_p4), %s2816_s22, 32  }
 0x7fe   : > { %3911 = vsyncadd (%p3264_p4), %s2816_s22, 4294967264  ;;  %s5134_s11 = sld [smem:[#allocation25_spill]]  ;;  %p33_p3 = scmp.ge.s32.totalorder %s4135_s23, 4  }
 0x7ff   : > { %s5135_s29 = smov %s3918_s30  ;;  %s5136_s30 = smov %s3922_s15 }
 0x800   : > { %s5138_s16 = smov %s4135_s23  ;;  %35 = sbr.rel (!%p33_p3) target bundleno = 21 (0x15), region = 162 }
 0x804   : > { %s5137_s15 = smov %s5134_s11 }
 0x805   :  { %2821 = vsyncpa [#allocation3], 1 }
 0x806   :  { %2823 = vsyncpa [#allocation3 + $0x1], 1 }
 0x807   :  { %2824 = vsyncpa [#allocation6], 1 }
 0x808   :  { %2826 = vsyncpa [#allocation6 + $0x1], 1 }
 0x809   :  { %2827 = vsyncpa [#allocation9], 1 }
 0x80a   :  { %2828 = vsyncpa [#allocation12], 1 }
 0x80b   :  { %2829 = vsyncpa [#allocation15], 1 }
 0x80c   :  { %2830 = vsyncpa [#allocation4], 1 }
 0x80d   :  { %2832 = vsyncpa [#allocation4 + $0x1], 1 }

</bundles_post_ra>
